<compile_context>
chip_gen: v7x
topology: tpu7x:2x2x1
jax: 0.10.0
libtpu: 0.0.40
codegen_flags: <defaults>
</compile_context>

<pallas_src>
import functools

import jax
import jax.numpy as jnp
from jax import lax
from jax.experimental import pallas as pl
from jax.experimental.pallas import tpu as pltpu

NUM_HEADS = 8
DIM = 128
HEAD_DIM = DIM // NUM_HEADS
NEG_INF = -1e9


def rope_mhsa_kernel(*refs, mask_mode, compute_dtype, exp_dtype):
    if mask_mode == "explicit":
        (x_ref, w_all_ref, wo_ref, cos_ref, sin_ref, mask_ref, o_ref, ctx_ref) = refs
    else:
        (x_ref, w_all_ref, wo_ref, cos_ref, sin_ref, o_ref, ctx_ref) = refs

    x = x_ref[0]                              # (S, D), already compute_dtype when bf16
    S = x.shape[0]
    xc = x.astype(compute_dtype)

    # Single fused projection matmul: x @ [Wq | Wk | Wv | Wq@P | Wk@P] -> (S, 5*D).
    proj = jnp.dot(xc, w_all_ref[...], preferred_element_type=jnp.float32)
    q = proj[:, 0 * DIM:1 * DIM]             # 128-lane-aligned slices (free)
    k = proj[:, 1 * DIM:2 * DIM]
    v = proj[:, 2 * DIM:3 * DIM]
    qp = proj[:, 3 * DIM:4 * DIM]
    kp = proj[:, 4 * DIM:5 * DIM]

    # RoPE (interleaved-pair complex multiply, real math, f32):
    #   out[2i]   = q[2i]*cos_i - q[2i+1]*sin_i
    #   out[2i+1] = q[2i+1]*cos_i + q[2i]*sin_i
    # with qp = x @ (Wq @ P) already holding the pair-swapped-with-sign values.
    cosf = cos_ref[...]
    sinf = sin_ref[...]
    q_rot = q * cosf + qp * sinf
    k_rot = k * cosf + kp * sinf

    scale = 1.0 / (HEAD_DIM ** 0.5)

    # Mask bias, built once and shared across heads.
    if mask_mode == "none":
        bias = None
        pmask = None
    elif mask_mode == "causal":
        row = lax.broadcasted_iota(jnp.int32, (S, S), 0)
        col = lax.broadcasted_iota(jnp.int32, (S, S), 1)
        bias = jnp.where(row >= col, 0.0, NEG_INF).astype(jnp.float32)
        # Post-softmax multiply is redundant for causal: masked entries are exactly 0
        # after the -1e9 bias + max-subtraction, and every row attends to its diagonal.
        pmask = None
    else:  # "explicit"
        maskf = mask_ref[0].astype(jnp.float32)   # int8 0/1 -> f32
        bias = (1.0 - maskf) * NEG_INF
        pmask = maskf

    # Cast MXU operands once (no-ops when compute_dtype == f32).
    q_c = q_rot.astype(compute_dtype)
    k_c = k_rot.astype(compute_dtype)
    v_c = v.astype(compute_dtype)
    approx = compute_dtype == jnp.bfloat16

    # Per-head attention.  Each head's (S, 16) context is stored lane-aligned into the
    # (S, 128) VMEM scratch; the output projection is done once, full-K, after the loop.
    for h in range(NUM_HEADS):                # static unrolled loop over heads
        lo = h * HEAD_DIM
        qh = q_c[:, lo:lo + HEAD_DIM]
        kh = k_c[:, lo:lo + HEAD_DIM]
        vh = v_c[:, lo:lo + HEAD_DIM]
        # scores = qh @ kh^T (contract last dims; avoids an explicit transpose)
        s = lax.dot_general(qh, kh, (((1,), (1,)), ((), ())),
                            preferred_element_type=jnp.float32) * scale
        if bias is not None:
            s = s + bias
        s = s - jnp.max(s, axis=-1, keepdims=True)
        e = jnp.exp(s.astype(exp_dtype))                       # bf16 exp on the EUP
        denom = jnp.sum(e.astype(jnp.float32), axis=-1, keepdims=True)
        inv = pl.reciprocal(denom, approx=approx)              # EUP slot, not VALU
        p = e * inv.astype(exp_dtype)
        if pmask is not None:
            p = p * pmask.astype(exp_dtype)   # matches `scores * mask` after softmax
        ctx_ref[:, lo:lo + HEAD_DIM] = jnp.dot(
            p.astype(compute_dtype), vh, preferred_element_type=jnp.float32)

    # Single full-K output projection: (S, 128) @ (128, 128).
    o_ref[0] = jnp.dot(ctx_ref[...].astype(compute_dtype), wo_ref[...],
                       preferred_element_type=jnp.float32)


def _vmem_ceiling_bytes():
    try:
        cap = int(pltpu.get_tpu_info().vmem_capacity_bytes)
    except Exception:
        cap = 128 * 1024 * 1024
    return int(0.78 * cap)


def _vmem_limit_bytes(S, D, w_itemsize, x_itemsize, explicit_mask):
    db = 2  # double buffering of pipelined blocks
    blocks = db * (S * D * x_itemsize              # x
                   + 5 * D * D * w_itemsize        # fused W_all
                   + D * D * w_itemsize            # Wo
                   + 2 * S * D * 4                 # cos / sin tables
                   + S * D * 4)                    # output
    if explicit_mask:
        blocks += db * S * S * 1                   # int8 mask
    scratch = S * D * 4                            # ctx scratch
    scratch += 12 * S * D * 4 + 4 * S * S * 4      # proj slab, rot, scores/probs
    est = int(1.3 * (blocks + scratch))
    return max(min(est, _vmem_ceiling_bytes()), 16 * 1024 * 1024)


def rope_mhsa(x, wq_t, wk_t, wv_t, wo_t, cos, sin, mask=None, *,
              causal=False, compute_dtype=jnp.bfloat16, exp_dtype=None):
    """x: (B,S,D); w*_t: (D,D) pre-transposed (in,out); cos/sin: (S, HEAD_DIM//2);
    mask: (B,S,S) bool/float or None.  causal=True generates the causal mask in-kernel
    (no HBM mask traffic).  compute_dtype=bfloat16 is the fast path on all TPU
    generations (MXU is natively bf16); float32 is a validation mode only."""
    B, S, D = x.shape
    assert D == DIM
    if exp_dtype is None:
        exp_dtype = jnp.bfloat16 if compute_dtype == jnp.bfloat16 else jnp.float32

    # Expand per-head (S, hd/2) cos/sin -> (S, D): repeat each value for the
    # (even, odd) pair and tile across heads (RoPE is identical for every head).
    cos_full = jnp.tile(jnp.repeat(cos, 2, axis=-1), (1, NUM_HEADS)).astype(jnp.float32)
    sin_full = jnp.tile(jnp.repeat(sin, 2, axis=-1), (1, NUM_HEADS)).astype(jnp.float32)

    # Pair-swap-with-sign matrix, folded into the Q/K weights (one-time, exact — P is a
    # signed permutation), so the kernel never multiplies by P at runtime.
    eye = jnp.eye(D // 2, dtype=jnp.float32)
    P = jnp.zeros((D, D), jnp.float32)
    P = P.at[1::2, 0::2].set(-eye)
    P = P.at[0::2, 1::2].set(eye)
    wqp_t = wq_t @ P
    wkp_t = wk_t @ P

    # Fused projection weight: (D, 5*D) = [Wq | Wk | Wv | Wq@P | Wk@P].
    w_all = jnp.concatenate([wq_t, wk_t, wv_t, wqp_t, wkp_t], axis=1).astype(compute_dtype)
    wo = wo_t.astype(compute_dtype)

    if causal:
        mask_mode = "causal"
    elif mask is None:
        mask_mode = "none"
    else:
        mask_mode = "explicit"

    # x in bf16 halves the only per-grid-step varying DMA; projections accumulate f32.
    x_in = x.astype(compute_dtype) if compute_dtype == jnp.bfloat16 else x.astype(jnp.float32)

    in_specs = [pl.BlockSpec((1, S, D), lambda b: (b, 0, 0)),          # x
                pl.BlockSpec((D, 5 * D), lambda b: (0, 0)),            # fused W_all
                pl.BlockSpec((D, D), lambda b: (0, 0)),                # Wo
                pl.BlockSpec((S, D), lambda b: (0, 0)),                # cos
                pl.BlockSpec((S, D), lambda b: (0, 0))]                # sin
    args = [x_in, w_all, wo, cos_full, sin_full]
    if mask_mode == "explicit":
        in_specs.append(pl.BlockSpec((1, S, S), lambda b: (b, 0, 0)))
        args.append(mask.astype(jnp.int8))                             # 0/1 int8 mask

    kernel = functools.partial(rope_mhsa_kernel,
                               mask_mode=mask_mode,
                               compute_dtype=compute_dtype,
                               exp_dtype=exp_dtype)

    vmem_limit = _vmem_limit_bytes(S, D,
                                   jnp.dtype(compute_dtype).itemsize,
                                   jnp.dtype(x_in.dtype).itemsize,
                                   mask_mode == "explicit")

    return pl.pallas_call(
        kernel,
        out_shape=jax.ShapeDtypeStruct((B, S, D), jnp.float32),
        grid_spec=pltpu.PrefetchScalarGridSpec(
            num_scalar_prefetch=0,
            grid=(B,),
            in_specs=in_specs,
            out_specs=pl.BlockSpec((1, S, D), lambda b: (b, 0, 0)),
            scratch_shapes=[pltpu.VMEM((S, D), jnp.float32)]),         # head-context slab
        compiler_params=pltpu.CompilerParams(
            dimension_semantics=("parallel",),
            vmem_limit_bytes=vmem_limit),
    )(*args)


def reference(x, wq_t, wk_t, wv_t, wo_t, cos, sin, mask):
    """Pure-JAX transcription of the PyTorch forward (for validation)."""
    B, S, D = x.shape
    H, hd = NUM_HEADS, HEAD_DIM
    q = (x @ wq_t).reshape(B, S, H, hd)
    k = (x @ wk_t).reshape(B, S, H, hd)
    v = (x @ wv_t).reshape(B, S, H, hd)

    def rot(t):
        tr = t.reshape(B, S, H, hd // 2, 2)
        te, to = tr[..., 0], tr[..., 1]
        c = cos[None, :, None, :]
        s = sin[None, :, None, :]
        return jnp.stack([te * c - to * s, te * s + to * c], axis=-1).reshape(B, S, H, hd)

    q, k = rot(q), rot(k)
    q = q.transpose(0, 2, 1, 3)
    k = k.transpose(0, 2, 1, 3)
    v = v.transpose(0, 2, 1, 3)
    scores = jnp.einsum('bhqd,bhkd->bhqk', q, k) / (hd ** 0.5)
    if mask is not None:
        m = mask[:, None].astype(jnp.float32)
        scores = scores + (1.0 - m) * (-1e9)
    p = jax.nn.softmax(scores, axis=-1)
    if mask is not None:
        p = p * m
    o = jnp.einsum('bhqk,bhkd->bhqd', p, v)
    return o.transpose(0, 2, 1, 3).reshape(B, S, D) @ wo_t


if __name__ == "__main__":
    B, S = 2, 8
    key = jax.random.PRNGKey(0)
    kx, kq, kk, kv, ko = jax.random.split(key, 5)

    x = jax.random.normal(kx, (B, S, DIM), jnp.float32)
    # nn.Linear(dim, dim, bias=False) weights, stored pre-transposed as (in, out).
    wq_t = 0.02 * jax.random.normal(kq, (DIM, DIM), jnp.float32)
    wk_t = 0.02 * jax.random.normal(kk, (DIM, DIM), jnp.float32)
    wv_t = 0.02 * jax.random.normal(kv, (DIM, DIM), jnp.float32)
    wo_t = 0.02 * jax.random.normal(ko, (DIM, DIM), jnp.float32)

    # freqs_cis = exp(i * pos * theta_j), theta_j = 10000^{-2j/head_dim}; keep cos/sin.
    inv_freq = 1.0 / (10000.0 ** (jnp.arange(0, HEAD_DIM, 2, dtype=jnp.float32) / HEAD_DIM))
    angles = jnp.arange(S, dtype=jnp.float32)[:, None] * inv_freq[None, :]   # (S, hd/2)
    cos, sin = jnp.cos(angles), jnp.sin(angles)

    # Causal boolean mask (B, S, S), used by the reference and the explicit-mask path.
    causal_mask = jnp.tril(jnp.ones((S, S), dtype=bool))[None].repeat(B, axis=0)
    ref_causal = reference(x, wq_t, wk_t, wv_t, wo_t, cos, sin, causal_mask)
    ref_nomask = reference(x, wq_t, wk_t, wv_t, wo_t, cos, sin, None)

    # 1) Main path: causal mask generated in-kernel, bf16 MXU operands + bf16 exp.
    out = jax.block_until_ready(
        rope_mhsa(x, wq_t, wk_t, wv_t, wo_t, cos, sin, causal=True))
    assert jnp.allclose(out, ref_causal, atol=3e-2, rtol=3e-2), \
        float(jnp.max(jnp.abs(out - ref_causal)))

    # 2) f32 validation path (tight tolerance).
    out32 = jax.block_until_ready(
        rope_mhsa(x, wq_t, wk_t, wv_t, wo_t, cos, sin, causal=True,
                  compute_dtype=jnp.float32))
    assert jnp.allclose(out32, ref_causal, atol=2e-4, rtol=2e-4), \
        float(jnp.max(jnp.abs(out32 - ref_causal)))

    # 3) Explicit (arbitrary) mask fallback path — mask travels as int8.
    out_ex = jax.block_until_ready(
        rope_mhsa(x, wq_t, wk_t, wv_t, wo_t, cos, sin, mask=causal_mask))
    assert jnp.allclose(out_ex, ref_causal, atol=3e-2, rtol=3e-2), \
        float(jnp.max(jnp.abs(out_ex - ref_causal)))

    # 4) mask=None path (no bias, no post-softmax multiply).
    out_nm = jax.block_until_ready(
        rope_mhsa(x, wq_t, wk_t, wv_t, wo_t, cos, sin, mask=None))
    assert jnp.allclose(out_nm, ref_nomask, atol=3e-2, rtol=3e-2), \
        float(jnp.max(jnp.abs(out_nm - ref_nomask)))

    print("KERNEL_OK")
</pallas_src>

<mosaic_0001>
module attributes {stable_mosaic.version = 11 : i64} {
  func.func @rope_mhsa_kernel(%arg0: i32, %arg1: memref<1x8x128xbf16, #tpu.memory_space<vmem>>, %arg2: memref<128x640xbf16, #tpu.memory_space<vmem>>, %arg3: memref<128x128xbf16, #tpu.memory_space<vmem>>, %arg4: memref<8x128xf32, #tpu.memory_space<vmem>>, %arg5: memref<8x128xf32, #tpu.memory_space<vmem>>, %arg6: memref<1x8x128xf32, #tpu.memory_space<vmem>>, %arg7: memref<8x128xf32, #tpu.memory_space<vmem>>) attributes {dimension_semantics = [#tpu.dimension_semantics<parallel>], iteration_bounds = array<i64: 2>, scalar_prefetch = 0 : i64, scratch_operands = 1 : i64, tpu.core_type = #tpu.core_type<tc>, window_params = [{transform_indices = @transform_0, window_bounds = array<i64: 1, 8, 128>}, {pipeline_mode = #tpu.pipeline_mode<synchronous>, transform_indices = @transform_1, window_bounds = array<i64: 128, 640>}, {pipeline_mode = #tpu.pipeline_mode<synchronous>, transform_indices = @transform_2, window_bounds = array<i64: 128, 128>}, {pipeline_mode = #tpu.pipeline_mode<synchronous>, transform_indices = @transform_3, window_bounds = array<i64: 8, 128>}, {pipeline_mode = #tpu.pipeline_mode<synchronous>, transform_indices = @transform_4, window_bounds = array<i64: 8, 128>}, {transform_indices = @transform_5, window_bounds = array<i64: 1, 8, 128>}]} {
    %c0 = arith.constant 0 : index
    %c0_0 = arith.constant 0 : index
    %c0_1 = arith.constant 0 : index
    %0 = vector.load %arg1[%c0, %c0_0, %c0_1] : memref<1x8x128xbf16, #tpu.memory_space<vmem>>, vector<1x8x128xbf16>
    %1 = vector.shape_cast %0 : vector<1x8x128xbf16> to vector<8x128xbf16>
    %c0_2 = arith.constant 0 : index
    %c0_3 = arith.constant 0 : index
    %2 = vector.load %arg2[%c0_2, %c0_3] : memref<128x640xbf16, #tpu.memory_space<vmem>>, vector<128x640xbf16>
    %cst = arith.constant dense<0.000000e+00> : vector<8x640xf32>
    %3 = tpu.matmul %1, %2, %cst {dimension_numbers = #tpu.dot_dimension_numbers<[1], [0], [0], [1], [0, 0, 1, 1], [], []>} : vector<8x128xbf16>, vector<128x640xbf16>, vector<8x640xf32> -> vector<8x640xf32>
    %4 = vector.extract_strided_slice %3 {offsets = [0, 0], sizes = [8, 128], strides = [1, 1]} : vector<8x640xf32> to vector<8x128xf32>
    %5 = vector.extract_strided_slice %3 {offsets = [0, 128], sizes = [8, 128], strides = [1, 1]} : vector<8x640xf32> to vector<8x128xf32>
    %6 = vector.extract_strided_slice %3 {offsets = [0, 256], sizes = [8, 128], strides = [1, 1]} : vector<8x640xf32> to vector<8x128xf32>
    %7 = vector.extract_strided_slice %3 {offsets = [0, 384], sizes = [8, 128], strides = [1, 1]} : vector<8x640xf32> to vector<8x128xf32>
    %8 = vector.extract_strided_slice %3 {offsets = [0, 512], sizes = [8, 128], strides = [1, 1]} : vector<8x640xf32> to vector<8x128xf32>
    %c0_4 = arith.constant 0 : index
    %c0_5 = arith.constant 0 : index
    %9 = vector.load %arg4[%c0_4, %c0_5] : memref<8x128xf32, #tpu.memory_space<vmem>>, vector<8x128xf32>
    %c0_6 = arith.constant 0 : index
    %c0_7 = arith.constant 0 : index
    %10 = vector.load %arg5[%c0_6, %c0_7] : memref<8x128xf32, #tpu.memory_space<vmem>>, vector<8x128xf32>
    %11 = arith.mulf %4, %9 : vector<8x128xf32>
    %12 = arith.mulf %7, %10 : vector<8x128xf32>
    %13 = arith.addf %11, %12 : vector<8x128xf32>
    %14 = arith.mulf %5, %9 : vector<8x128xf32>
    %15 = arith.mulf %8, %10 : vector<8x128xf32>
    %16 = arith.addf %14, %15 : vector<8x128xf32>
    %17 = tpu.iota {dimensions = array<i32: 0>} : vector<8x8xi32>
    %18 = tpu.iota {dimensions = array<i32: 1>} : vector<8x8xi32>
    %19 = arith.cmpi sge, %17, %18 : vector<8x8xi32>
    %cst_8 = arith.constant 0.000000e+00 : f32
    %cst_9 = arith.constant -1.000000e+09 : f32
    %20 = vector.broadcast %cst_8 : f32 to vector<8x8xf32>
    %21 = vector.broadcast %cst_9 : f32 to vector<8x8xf32>
    %22 = arith.select %19, %20, %21 : vector<8x8xi1>, vector<8x8xf32>
    %23 = arith.truncf %13 : vector<8x128xf32> to vector<8x128xbf16>
    %24 = arith.truncf %16 : vector<8x128xf32> to vector<8x128xbf16>
    %25 = arith.truncf %6 : vector<8x128xf32> to vector<8x128xbf16>
    %26 = vector.extract_strided_slice %23 {offsets = [0, 0], sizes = [8, 16], strides = [1, 1]} : vector<8x128xbf16> to vector<8x16xbf16>
    %27 = vector.extract_strided_slice %24 {offsets = [0, 0], sizes = [8, 16], strides = [1, 1]} : vector<8x128xbf16> to vector<8x16xbf16>
    %28 = vector.extract_strided_slice %25 {offsets = [0, 0], sizes = [8, 16], strides = [1, 1]} : vector<8x128xbf16> to vector<8x16xbf16>
    %cst_10 = arith.constant dense<0.000000e+00> : vector<8x8xf32>
    %29 = tpu.matmul %26, %27, %cst_10 {dimension_numbers = #tpu.dot_dimension_numbers<[1], [1], [0], [0], [0, 0, 1, 0], [], []>} : vector<8x16xbf16>, vector<8x16xbf16>, vector<8x8xf32> -> vector<8x8xf32>
    %cst_11 = arith.constant 2.500000e-01 : f32
    %30 = vector.broadcast %cst_11 : f32 to vector<8x8xf32>
    %31 = arith.mulf %29, %30 : vector<8x8xf32>
    %32 = arith.addf %31, %22 : vector<8x8xf32>
    %cst_12 = arith.constant dense<0xFF800000> : vector<8xf32>
    %33 = vector.multi_reduction <maximumf>, %32, %cst_12 [1] : vector<8x8xf32> to vector<8xf32>
    %34 = vector.shape_cast %33 : vector<8xf32> to vector<8x1xf32>
    %35 = vector.broadcast %34 : vector<8x1xf32> to vector<8x8xf32>
    %36 = arith.subf %32, %35 : vector<8x8xf32>
    %37 = arith.truncf %36 : vector<8x8xf32> to vector<8x8xbf16>
    %38 = math.exp %37 : vector<8x8xbf16>
    %39 = arith.extf %38 : vector<8x8xbf16> to vector<8x8xf32>
    %cst_13 = arith.constant dense<0.000000e+00> : vector<8xf32>
    %40 = vector.multi_reduction <add>, %39, %cst_13 [1] : vector<8x8xf32> to vector<8xf32>
    %41 = vector.shape_cast %40 : vector<8xf32> to vector<8x1xf32>
    %42 = tpu.reciprocal %41 {approx = true} : vector<8x1xf32> -> vector<8x1xf32>
    %43 = arith.truncf %42 : vector<8x1xf32> to vector<8x1xbf16>
    %44 = vector.broadcast %43 : vector<8x1xbf16> to vector<8x8xbf16>
    %45 = arith.mulf %38, %44 : vector<8x8xbf16>
    %cst_14 = arith.constant dense<0.000000e+00> : vector<8x16xf32>
    %46 = tpu.matmul %45, %28, %cst_14 {dimension_numbers = #tpu.dot_dimension_numbers<[1], [0], [0], [1], [0, 0, 1, 1], [], []>} : vector<8x8xbf16>, vector<8x16xbf16>, vector<8x16xf32> -> vector<8x16xf32>
    %c0_15 = arith.constant 0 : index
    %c0_16 = arith.constant 0 : index
    %47 = vector.load %arg7[%c0_15, %c0_16] : memref<8x128xf32, #tpu.memory_space<vmem>>, vector<8x16xf32>
    tpu.vector_store %arg7[%c0_15, %c0_16], %46 {strides = array<i32>} : memref<8x128xf32, #tpu.memory_space<vmem>>, vector<8x16xf32>,
    %48 = vector.extract_strided_slice %23 {offsets = [0, 16], sizes = [8, 16], strides = [1, 1]} : vector<8x128xbf16> to vector<8x16xbf16>
    %49 = vector.extract_strided_slice %24 {offsets = [0, 16], sizes = [8, 16], strides = [1, 1]} : vector<8x128xbf16> to vector<8x16xbf16>
    %50 = vector.extract_strided_slice %25 {offsets = [0, 16], sizes = [8, 16], strides = [1, 1]} : vector<8x128xbf16> to vector<8x16xbf16>
    %cst_17 = arith.constant dense<0.000000e+00> : vector<8x8xf32>
    %51 = tpu.matmul %48, %49, %cst_17 {dimension_numbers = #tpu.dot_dimension_numbers<[1], [1], [0], [0], [0, 0, 1, 0], [], []>} : vector<8x16xbf16>, vector<8x16xbf16>, vector<8x8xf32> -> vector<8x8xf32>
    %cst_18 = arith.constant 2.500000e-01 : f32
    %52 = vector.broadcast %cst_18 : f32 to vector<8x8xf32>
    %53 = arith.mulf %51, %52 : vector<8x8xf32>
    %54 = arith.addf %53, %22 : vector<8x8xf32>
    %cst_19 = arith.constant dense<0xFF800000> : vector<8xf32>
    %55 = vector.multi_reduction <maximumf>, %54, %cst_19 [1] : vector<8x8xf32> to vector<8xf32>
    %56 = vector.shape_cast %55 : vector<8xf32> to vector<8x1xf32>
    %57 = vector.broadcast %56 : vector<8x1xf32> to vector<8x8xf32>
    %58 = arith.subf %54, %57 : vector<8x8xf32>
    %59 = arith.truncf %58 : vector<8x8xf32> to vector<8x8xbf16>
    %60 = math.exp %59 : vector<8x8xbf16>
    %61 = arith.extf %60 : vector<8x8xbf16> to vector<8x8xf32>
    %cst_20 = arith.constant dense<0.000000e+00> : vector<8xf32>
    %62 = vector.multi_reduction <add>, %61, %cst_20 [1] : vector<8x8xf32> to vector<8xf32>
    %63 = vector.shape_cast %62 : vector<8xf32> to vector<8x1xf32>
    %64 = tpu.reciprocal %63 {approx = true} : vector<8x1xf32> -> vector<8x1xf32>
    %65 = arith.truncf %64 : vector<8x1xf32> to vector<8x1xbf16>
    %66 = vector.broadcast %65 : vector<8x1xbf16> to vector<8x8xbf16>
    %67 = arith.mulf %60, %66 : vector<8x8xbf16>
    %cst_21 = arith.constant dense<0.000000e+00> : vector<8x16xf32>
    %68 = tpu.matmul %67, %50, %cst_21 {dimension_numbers = #tpu.dot_dimension_numbers<[1], [0], [0], [1], [0, 0, 1, 1], [], []>} : vector<8x8xbf16>, vector<8x16xbf16>, vector<8x16xf32> -> vector<8x16xf32>
    %c0_22 = arith.constant 0 : index
    %c16 = arith.constant 16 : index
    %69 = vector.load %arg7[%c0_22, %c16] : memref<8x128xf32, #tpu.memory_space<vmem>>, vector<8x16xf32>
    tpu.vector_store %arg7[%c0_22, %c16], %68 {strides = array<i32>} : memref<8x128xf32, #tpu.memory_space<vmem>>, vector<8x16xf32>,
    %70 = vector.extract_strided_slice %23 {offsets = [0, 32], sizes = [8, 16], strides = [1, 1]} : vector<8x128xbf16> to vector<8x16xbf16>
    %71 = vector.extract_strided_slice %24 {offsets = [0, 32], sizes = [8, 16], strides = [1, 1]} : vector<8x128xbf16> to vector<8x16xbf16>
    %72 = vector.extract_strided_slice %25 {offsets = [0, 32], sizes = [8, 16], strides = [1, 1]} : vector<8x128xbf16> to vector<8x16xbf16>
    %cst_23 = arith.constant dense<0.000000e+00> : vector<8x8xf32>
    %73 = tpu.matmul %70, %71, %cst_23 {dimension_numbers = #tpu.dot_dimension_numbers<[1], [1], [0], [0], [0, 0, 1, 0], [], []>} : vector<8x16xbf16>, vector<8x16xbf16>, vector<8x8xf32> -> vector<8x8xf32>
    %cst_24 = arith.constant 2.500000e-01 : f32
    %74 = vector.broadcast %cst_24 : f32 to vector<8x8xf32>
    %75 = arith.mulf %73, %74 : vector<8x8xf32>
    %76 = arith.addf %75, %22 : vector<8x8xf32>
    %cst_25 = arith.constant dense<0xFF800000> : vector<8xf32>
    %77 = vector.multi_reduction <maximumf>, %76, %cst_25 [1] : vector<8x8xf32> to vector<8xf32>
    %78 = vector.shape_cast %77 : vector<8xf32> to vector<8x1xf32>
    %79 = vector.broadcast %78 : vector<8x1xf32> to vector<8x8xf32>
    %80 = arith.subf %76, %79 : vector<8x8xf32>
    %81 = arith.truncf %80 : vector<8x8xf32> to vector<8x8xbf16>
    %82 = math.exp %81 : vector<8x8xbf16>
    %83 = arith.extf %82 : vector<8x8xbf16> to vector<8x8xf32>
    %cst_26 = arith.constant dense<0.000000e+00> : vector<8xf32>
    %84 = vector.multi_reduction <add>, %83, %cst_26 [1] : vector<8x8xf32> to vector<8xf32>
    %85 = vector.shape_cast %84 : vector<8xf32> to vector<8x1xf32>
    %86 = tpu.reciprocal %85 {approx = true} : vector<8x1xf32> -> vector<8x1xf32>
    %87 = arith.truncf %86 : vector<8x1xf32> to vector<8x1xbf16>
    %88 = vector.broadcast %87 : vector<8x1xbf16> to vector<8x8xbf16>
    %89 = arith.mulf %82, %88 : vector<8x8xbf16>
    %cst_27 = arith.constant dense<0.000000e+00> : vector<8x16xf32>
    %90 = tpu.matmul %89, %72, %cst_27 {dimension_numbers = #tpu.dot_dimension_numbers<[1], [0], [0], [1], [0, 0, 1, 1], [], []>} : vector<8x8xbf16>, vector<8x16xbf16>, vector<8x16xf32> -> vector<8x16xf32>
    %c0_28 = arith.constant 0 : index
    %c32 = arith.constant 32 : index
    %91 = vector.load %arg7[%c0_28, %c32] : memref<8x128xf32, #tpu.memory_space<vmem>>, vector<8x16xf32>
    tpu.vector_store %arg7[%c0_28, %c32], %90 {strides = array<i32>} : memref<8x128xf32, #tpu.memory_space<vmem>>, vector<8x16xf32>,
    %92 = vector.extract_strided_slice %23 {offsets = [0, 48], sizes = [8, 16], strides = [1, 1]} : vector<8x128xbf16> to vector<8x16xbf16>
    %93 = vector.extract_strided_slice %24 {offsets = [0, 48], sizes = [8, 16], strides = [1, 1]} : vector<8x128xbf16> to vector<8x16xbf16>
    %94 = vector.extract_strided_slice %25 {offsets = [0, 48], sizes = [8, 16], strides = [1, 1]} : vector<8x128xbf16> to vector<8x16xbf16>
    %cst_29 = arith.constant dense<0.000000e+00> : vector<8x8xf32>
    %95 = tpu.matmul %92, %93, %cst_29 {dimension_numbers = #tpu.dot_dimension_numbers<[1], [1], [0], [0], [0, 0, 1, 0], [], []>} : vector<8x16xbf16>, vector<8x16xbf16>, vector<8x8xf32> -> vector<8x8xf32>
    %cst_30 = arith.constant 2.500000e-01 : f32
    %96 = vector.broadcast %cst_30 : f32 to vector<8x8xf32>
    %97 = arith.mulf %95, %96 : vector<8x8xf32>
    %98 = arith.addf %97, %22 : vector<8x8xf32>
    %cst_31 = arith.constant dense<0xFF800000> : vector<8xf32>
    %99 = vector.multi_reduction <maximumf>, %98, %cst_31 [1] : vector<8x8xf32> to vector<8xf32>
    %100 = vector.shape_cast %99 : vector<8xf32> to vector<8x1xf32>
    %101 = vector.broadcast %100 : vector<8x1xf32> to vector<8x8xf32>
    %102 = arith.subf %98, %101 : vector<8x8xf32>
    %103 = arith.truncf %102 : vector<8x8xf32> to vector<8x8xbf16>
    %104 = math.exp %103 : vector<8x8xbf16>
    %105 = arith.extf %104 : vector<8x8xbf16> to vector<8x8xf32>
    %cst_32 = arith.constant dense<0.000000e+00> : vector<8xf32>
    %106 = vector.multi_reduction <add>, %105, %cst_32 [1] : vector<8x8xf32> to vector<8xf32>
    %107 = vector.shape_cast %106 : vector<8xf32> to vector<8x1xf32>
    %108 = tpu.reciprocal %107 {approx = true} : vector<8x1xf32> -> vector<8x1xf32>
    %109 = arith.truncf %108 : vector<8x1xf32> to vector<8x1xbf16>
    %110 = vector.broadcast %109 : vector<8x1xbf16> to vector<8x8xbf16>
    %111 = arith.mulf %104, %110 : vector<8x8xbf16>
    %cst_33 = arith.constant dense<0.000000e+00> : vector<8x16xf32>
    %112 = tpu.matmul %111, %94, %cst_33 {dimension_numbers = #tpu.dot_dimension_numbers<[1], [0], [0], [1], [0, 0, 1, 1], [], []>} : vector<8x8xbf16>, vector<8x16xbf16>, vector<8x16xf32> -> vector<8x16xf32>
    %c0_34 = arith.constant 0 : index
    %c48 = arith.constant 48 : index
    %113 = vector.load %arg7[%c0_34, %c48] : memref<8x128xf32, #tpu.memory_space<vmem>>, vector<8x16xf32>
    tpu.vector_store %arg7[%c0_34, %c48], %112 {strides = array<i32>} : memref<8x128xf32, #tpu.memory_space<vmem>>, vector<8x16xf32>,
    %114 = vector.extract_strided_slice %23 {offsets = [0, 64], sizes = [8, 16], strides = [1, 1]} : vector<8x128xbf16> to vector<8x16xbf16>
    %115 = vector.extract_strided_slice %24 {offsets = [0, 64], sizes = [8, 16], strides = [1, 1]} : vector<8x128xbf16> to vector<8x16xbf16>
    %116 = vector.extract_strided_slice %25 {offsets = [0, 64], sizes = [8, 16], strides = [1, 1]} : vector<8x128xbf16> to vector<8x16xbf16>
    %cst_35 = arith.constant dense<0.000000e+00> : vector<8x8xf32>
    %117 = tpu.matmul %114, %115, %cst_35 {dimension_numbers = #tpu.dot_dimension_numbers<[1], [1], [0], [0], [0, 0, 1, 0], [], []>} : vector<8x16xbf16>, vector<8x16xbf16>, vector<8x8xf32> -> vector<8x8xf32>
    %cst_36 = arith.constant 2.500000e-01 : f32
    %118 = vector.broadcast %cst_36 : f32 to vector<8x8xf32>
    %119 = arith.mulf %117, %118 : vector<8x8xf32>
    %120 = arith.addf %119, %22 : vector<8x8xf32>
    %cst_37 = arith.constant dense<0xFF800000> : vector<8xf32>
    %121 = vector.multi_reduction <maximumf>, %120, %cst_37 [1] : vector<8x8xf32> to vector<8xf32>
    %122 = vector.shape_cast %121 : vector<8xf32> to vector<8x1xf32>
    %123 = vector.broadcast %122 : vector<8x1xf32> to vector<8x8xf32>
    %124 = arith.subf %120, %123 : vector<8x8xf32>
    %125 = arith.truncf %124 : vector<8x8xf32> to vector<8x8xbf16>
    %126 = math.exp %125 : vector<8x8xbf16>
    %127 = arith.extf %126 : vector<8x8xbf16> to vector<8x8xf32>
    %cst_38 = arith.constant dense<0.000000e+00> : vector<8xf32>
    %128 = vector.multi_reduction <add>, %127, %cst_38 [1] : vector<8x8xf32> to vector<8xf32>
    %129 = vector.shape_cast %128 : vector<8xf32> to vector<8x1xf32>
    %130 = tpu.reciprocal %129 {approx = true} : vector<8x1xf32> -> vector<8x1xf32>
    %131 = arith.truncf %130 : vector<8x1xf32> to vector<8x1xbf16>
    %132 = vector.broadcast %131 : vector<8x1xbf16> to vector<8x8xbf16>
    %133 = arith.mulf %126, %132 : vector<8x8xbf16>
    %cst_39 = arith.constant dense<0.000000e+00> : vector<8x16xf32>
    %134 = tpu.matmul %133, %116, %cst_39 {dimension_numbers = #tpu.dot_dimension_numbers<[1], [0], [0], [1], [0, 0, 1, 1], [], []>} : vector<8x8xbf16>, vector<8x16xbf16>, vector<8x16xf32> -> vector<8x16xf32>
    %c0_40 = arith.constant 0 : index
    %c64 = arith.constant 64 : index
    %135 = vector.load %arg7[%c0_40, %c64] : memref<8x128xf32, #tpu.memory_space<vmem>>, vector<8x16xf32>
    tpu.vector_store %arg7[%c0_40, %c64], %134 {strides = array<i32>} : memref<8x128xf32, #tpu.memory_space<vmem>>, vector<8x16xf32>,
    %136 = vector.extract_strided_slice %23 {offsets = [0, 80], sizes = [8, 16], strides = [1, 1]} : vector<8x128xbf16> to vector<8x16xbf16>
    %137 = vector.extract_strided_slice %24 {offsets = [0, 80], sizes = [8, 16], strides = [1, 1]} : vector<8x128xbf16> to vector<8x16xbf16>
    %138 = vector.extract_strided_slice %25 {offsets = [0, 80], sizes = [8, 16], strides = [1, 1]} : vector<8x128xbf16> to vector<8x16xbf16>
    %cst_41 = arith.constant dense<0.000000e+00> : vector<8x8xf32>
    %139 = tpu.matmul %136, %137, %cst_41 {dimension_numbers = #tpu.dot_dimension_numbers<[1], [1], [0], [0], [0, 0, 1, 0], [], []>} : vector<8x16xbf16>, vector<8x16xbf16>, vector<8x8xf32> -> vector<8x8xf32>
    %cst_42 = arith.constant 2.500000e-01 : f32
    %140 = vector.broadcast %cst_42 : f32 to vector<8x8xf32>
    %141 = arith.mulf %139, %140 : vector<8x8xf32>
    %142 = arith.addf %141, %22 : vector<8x8xf32>
    %cst_43 = arith.constant dense<0xFF800000> : vector<8xf32>
    %143 = vector.multi_reduction <maximumf>, %142, %cst_43 [1] : vector<8x8xf32> to vector<8xf32>
    %144 = vector.shape_cast %143 : vector<8xf32> to vector<8x1xf32>
    %145 = vector.broadcast %144 : vector<8x1xf32> to vector<8x8xf32>
    %146 = arith.subf %142, %145 : vector<8x8xf32>
    %147 = arith.truncf %146 : vector<8x8xf32> to vector<8x8xbf16>
    %148 = math.exp %147 : vector<8x8xbf16>
    %149 = arith.extf %148 : vector<8x8xbf16> to vector<8x8xf32>
    %cst_44 = arith.constant dense<0.000000e+00> : vector<8xf32>
    %150 = vector.multi_reduction <add>, %149, %cst_44 [1] : vector<8x8xf32> to vector<8xf32>
    %151 = vector.shape_cast %150 : vector<8xf32> to vector<8x1xf32>
    %152 = tpu.reciprocal %151 {approx = true} : vector<8x1xf32> -> vector<8x1xf32>
    %153 = arith.truncf %152 : vector<8x1xf32> to vector<8x1xbf16>
    %154 = vector.broadcast %153 : vector<8x1xbf16> to vector<8x8xbf16>
    %155 = arith.mulf %148, %154 : vector<8x8xbf16>
    %cst_45 = arith.constant dense<0.000000e+00> : vector<8x16xf32>
    %156 = tpu.matmul %155, %138, %cst_45 {dimension_numbers = #tpu.dot_dimension_numbers<[1], [0], [0], [1], [0, 0, 1, 1], [], []>} : vector<8x8xbf16>, vector<8x16xbf16>, vector<8x16xf32> -> vector<8x16xf32>
    %c0_46 = arith.constant 0 : index
    %c80 = arith.constant 80 : index
    %157 = vector.load %arg7[%c0_46, %c80] : memref<8x128xf32, #tpu.memory_space<vmem>>, vector<8x16xf32>
    tpu.vector_store %arg7[%c0_46, %c80], %156 {strides = array<i32>} : memref<8x128xf32, #tpu.memory_space<vmem>>, vector<8x16xf32>,
    %158 = vector.extract_strided_slice %23 {offsets = [0, 96], sizes = [8, 16], strides = [1, 1]} : vector<8x128xbf16> to vector<8x16xbf16>
    %159 = vector.extract_strided_slice %24 {offsets = [0, 96], sizes = [8, 16], strides = [1, 1]} : vector<8x128xbf16> to vector<8x16xbf16>
    %160 = vector.extract_strided_slice %25 {offsets = [0, 96], sizes = [8, 16], strides = [1, 1]} : vector<8x128xbf16> to vector<8x16xbf16>
    %cst_47 = arith.constant dense<0.000000e+00> : vector<8x8xf32>
    %161 = tpu.matmul %158, %159, %cst_47 {dimension_numbers = #tpu.dot_dimension_numbers<[1], [1], [0], [0], [0, 0, 1, 0], [], []>} : vector<8x16xbf16>, vector<8x16xbf16>, vector<8x8xf32> -> vector<8x8xf32>
    %cst_48 = arith.constant 2.500000e-01 : f32
    %162 = vector.broadcast %cst_48 : f32 to vector<8x8xf32>
    %163 = arith.mulf %161, %162 : vector<8x8xf32>
    %164 = arith.addf %163, %22 : vector<8x8xf32>
    %cst_49 = arith.constant dense<0xFF800000> : vector<8xf32>
    %165 = vector.multi_reduction <maximumf>, %164, %cst_49 [1] : vector<8x8xf32> to vector<8xf32>
    %166 = vector.shape_cast %165 : vector<8xf32> to vector<8x1xf32>
    %167 = vector.broadcast %166 : vector<8x1xf32> to vector<8x8xf32>
    %168 = arith.subf %164, %167 : vector<8x8xf32>
    %169 = arith.truncf %168 : vector<8x8xf32> to vector<8x8xbf16>
    %170 = math.exp %169 : vector<8x8xbf16>
    %171 = arith.extf %170 : vector<8x8xbf16> to vector<8x8xf32>
    %cst_50 = arith.constant dense<0.000000e+00> : vector<8xf32>
    %172 = vector.multi_reduction <add>, %171, %cst_50 [1] : vector<8x8xf32> to vector<8xf32>
    %173 = vector.shape_cast %172 : vector<8xf32> to vector<8x1xf32>
    %174 = tpu.reciprocal %173 {approx = true} : vector<8x1xf32> -> vector<8x1xf32>
    %175 = arith.truncf %174 : vector<8x1xf32> to vector<8x1xbf16>
    %176 = vector.broadcast %175 : vector<8x1xbf16> to vector<8x8xbf16>
    %177 = arith.mulf %170, %176 : vector<8x8xbf16>
    %cst_51 = arith.constant dense<0.000000e+00> : vector<8x16xf32>
    %178 = tpu.matmul %177, %160, %cst_51 {dimension_numbers = #tpu.dot_dimension_numbers<[1], [0], [0], [1], [0, 0, 1, 1], [], []>} : vector<8x8xbf16>, vector<8x16xbf16>, vector<8x16xf32> -> vector<8x16xf32>
    %c0_52 = arith.constant 0 : index
    %c96 = arith.constant 96 : index
    %179 = vector.load %arg7[%c0_52, %c96] : memref<8x128xf32, #tpu.memory_space<vmem>>, vector<8x16xf32>
    tpu.vector_store %arg7[%c0_52, %c96], %178 {strides = array<i32>} : memref<8x128xf32, #tpu.memory_space<vmem>>, vector<8x16xf32>,
    %180 = vector.extract_strided_slice %23 {offsets = [0, 112], sizes = [8, 16], strides = [1, 1]} : vector<8x128xbf16> to vector<8x16xbf16>
    %181 = vector.extract_strided_slice %24 {offsets = [0, 112], sizes = [8, 16], strides = [1, 1]} : vector<8x128xbf16> to vector<8x16xbf16>
    %182 = vector.extract_strided_slice %25 {offsets = [0, 112], sizes = [8, 16], strides = [1, 1]} : vector<8x128xbf16> to vector<8x16xbf16>
    %cst_53 = arith.constant dense<0.000000e+00> : vector<8x8xf32>
    %183 = tpu.matmul %180, %181, %cst_53 {dimension_numbers = #tpu.dot_dimension_numbers<[1], [1], [0], [0], [0, 0, 1, 0], [], []>} : vector<8x16xbf16>, vector<8x16xbf16>, vector<8x8xf32> -> vector<8x8xf32>
    %cst_54 = arith.constant 2.500000e-01 : f32
    %184 = vector.broadcast %cst_54 : f32 to vector<8x8xf32>
    %185 = arith.mulf %183, %184 : vector<8x8xf32>
    %186 = arith.addf %185, %22 : vector<8x8xf32>
    %cst_55 = arith.constant dense<0xFF800000> : vector<8xf32>
    %187 = vector.multi_reduction <maximumf>, %186, %cst_55 [1] : vector<8x8xf32> to vector<8xf32>
    %188 = vector.shape_cast %187 : vector<8xf32> to vector<8x1xf32>
    %189 = vector.broadcast %188 : vector<8x1xf32> to vector<8x8xf32>
    %190 = arith.subf %186, %189 : vector<8x8xf32>
    %191 = arith.truncf %190 : vector<8x8xf32> to vector<8x8xbf16>
    %192 = math.exp %191 : vector<8x8xbf16>
    %193 = arith.extf %192 : vector<8x8xbf16> to vector<8x8xf32>
    %cst_56 = arith.constant dense<0.000000e+00> : vector<8xf32>
    %194 = vector.multi_reduction <add>, %193, %cst_56 [1] : vector<8x8xf32> to vector<8xf32>
    %195 = vector.shape_cast %194 : vector<8xf32> to vector<8x1xf32>
    %196 = tpu.reciprocal %195 {approx = true} : vector<8x1xf32> -> vector<8x1xf32>
    %197 = arith.truncf %196 : vector<8x1xf32> to vector<8x1xbf16>
    %198 = vector.broadcast %197 : vector<8x1xbf16> to vector<8x8xbf16>
    %199 = arith.mulf %192, %198 : vector<8x8xbf16>
    %cst_57 = arith.constant dense<0.000000e+00> : vector<8x16xf32>
    %200 = tpu.matmul %199, %182, %cst_57 {dimension_numbers = #tpu.dot_dimension_numbers<[1], [0], [0], [1], [0, 0, 1, 1], [], []>} : vector<8x8xbf16>, vector<8x16xbf16>, vector<8x16xf32> -> vector<8x16xf32>
    %c0_58 = arith.constant 0 : index
    %c112 = arith.constant 112 : index
    %201 = vector.load %arg7[%c0_58, %c112] : memref<8x128xf32, #tpu.memory_space<vmem>>, vector<8x16xf32>
    tpu.vector_store %arg7[%c0_58, %c112], %200 {strides = array<i32>} : memref<8x128xf32, #tpu.memory_space<vmem>>, vector<8x16xf32>,
    %c0_59 = arith.constant 0 : index
    %c0_60 = arith.constant 0 : index
    %202 = vector.load %arg7[%c0_59, %c0_60] : memref<8x128xf32, #tpu.memory_space<vmem>>, vector<8x128xf32>
    %203 = arith.truncf %202 : vector<8x128xf32> to vector<8x128xbf16>
    %c0_61 = arith.constant 0 : index
    %c0_62 = arith.constant 0 : index
    %204 = vector.load %arg3[%c0_61, %c0_62] : memref<128x128xbf16, #tpu.memory_space<vmem>>, vector<128x128xbf16>
    %cst_63 = arith.constant dense<0.000000e+00> : vector<8x128xf32>
    %205 = tpu.matmul %203, %204, %cst_63 {dimension_numbers = #tpu.dot_dimension_numbers<[1], [0], [0], [1], [0, 0, 1, 1], [], []>} : vector<8x128xbf16>, vector<128x128xbf16>, vector<8x128xf32> -> vector<8x128xf32>
    %c0_64 = arith.constant 0 : index
    %c0_65 = arith.constant 0 : index
    %c0_66 = arith.constant 0 : index
    %206 = vector.load %arg6[%c0_64, %c0_65, %c0_66] : memref<1x8x128xf32, #tpu.memory_space<vmem>>, vector<1x8x128xf32>
    %207 = vector.shape_cast %206 : vector<1x8x128xf32> to vector<8x128xf32>
    %208 = vector.shape_cast %205 : vector<8x128xf32> to vector<1x8x128xf32>
    tpu.vector_store %arg6[%c0_64, %c0_65, %c0_66], %208 {strides = array<i32>} : memref<1x8x128xf32, #tpu.memory_space<vmem>>, vector<1x8x128xf32>,
    return
  }
  func.func @transform_0(%arg0: i32) -> (i32, i32, i32) {
    %c0_i32 = arith.constant 0 : i32
    %c0_i32_0 = arith.constant 0 : i32
    %c0_i32_1 = arith.constant 0 : i32
    return %arg0, %c0_i32, %c0_i32_0 : i32, i32, i32
  }
  func.func @transform_1(%arg0: i32) -> (i32, i32) {
    %c0_i32 = arith.constant 0 : i32
    %c0_i32_0 = arith.constant 0 : i32
    %c0_i32_1 = arith.constant 0 : i32
    return %c0_i32, %c0_i32_0 : i32, i32
  }
  func.func @transform_2(%arg0: i32) -> (i32, i32) {
    %c0_i32 = arith.constant 0 : i32
    %c0_i32_0 = arith.constant 0 : i32
    %c0_i32_1 = arith.constant 0 : i32
    return %c0_i32, %c0_i32_0 : i32, i32
  }
  func.func @transform_3(%arg0: i32) -> (i32, i32) {
    %c0_i32 = arith.constant 0 : i32
    %c0_i32_0 = arith.constant 0 : i32
    %c0_i32_1 = arith.constant 0 : i32
    return %c0_i32, %c0_i32_0 : i32, i32
  }
  func.func @transform_4(%arg0: i32) -> (i32, i32) {
    %c0_i32 = arith.constant 0 : i32
    %c0_i32_0 = arith.constant 0 : i32
    %c0_i32_1 = arith.constant 0 : i32
    return %c0_i32, %c0_i32_0 : i32, i32
  }
  func.func @transform_5(%arg0: i32) -> (i32, i32, i32) {
    %c0_i32 = arith.constant 0 : i32
    %c0_i32_0 = arith.constant 0 : i32
    %c0_i32_1 = arith.constant 0 : i32
    return %arg0, %c0_i32, %c0_i32_0 : i32, i32, i32
  }
}

</mosaic_0001>

<bundles_post_ra>
// kernel: tpu_custom_call.1
= control target key start
LH: loop header
LB: loop body
LE: loop exit
PB: predicated region body
PF: predicated region fallthrough
CT: control target
= control target key end

     0   :  { %10 = vsyncpa [#allocation4], 0  ;;  %s3023_s0 = inlined_call_operand.hbm [shape: bf16[2,8,128], index: 0, kind: input, shape index: {}]   ;;  %s3024_s1 = inlined_call_operand.hbm [shape: bf16[128,640], index: 1, kind: input, shape index: {}]   ;;  %s3025_s2 = inlined_call_operand.hbm [shape: bf16[128,128], index: 2, kind: input, shape index: {}]   ;;  %s3026_s3 = inlined_call_operand.vmem [shape: f32[8,128], index: 3, kind: input, shape index: {}]   ;;  %s3027_s4 = inlined_call_operand.hbm [shape: f32[8,128], index: 4, kind: input, shape index: {}]   ;;  %s3028_s5 = inlined_call_operand.hbm [shape: f32[2,8,128], index: 5, kind: output, shape index: {}]  }
   0x1   :  { %12 = vsyncpa [#allocation4 + $0x1], 0 }
   0x2   :  { %13 = vsyncpa [#allocation7], 0 }
   0x3   :  { %14 = vsyncpa [#allocation10], 0 }
   0x4   :  { %15 = vsyncpa [#allocation5], 0 }
   0x5   :  { %17 = vsyncpa [#allocation5 + $0x1], 0  ;;  %s2558_s18 = smov 0   ;;  %s2560_s19 = smov 0  }
   0x6   :  { %s2562_s20 = smov 0   ;;  %s2564_s21 = smov 0  }
   0x7 LB: > { %s2579_s22 = sadd.s32 4294967295, %s2506_s21   ;;  %s1862_s23 = sadd.s32 4294967294, %s2506_s21   ;;  %s2506_s21 = sphi %s2564_s21, %s3051_s21   ;;  %s2502_s20 = sphi %s2562_s20, %s3050_s20   ;;  %s2498_s19 = sphi %s2560_s19, %s3049_s19   ;;  %s2494_s18 = sphi %s2558_s18, %s3048_s18  }
   0x8   : > { %p43_p0 = scmp.ne.s32.totalorder %s2498_s19, %s2494_s18  ;;  %p3029_p1 = scmp.eq.s32.totalorder %s2579_s22, 0 }
   0x9   : > { %p157_p3 = scmp.eq.s32.totalorder %s1862_s23, 1  ;;  %p1863_p5 = scmp.ge.s32.totalorder %s2506_s21, 1 }
   0xa   : > { %p2588_p4 = por %p3029_p1, %p43_p0  ;;  %p164_p7 = scmp.lt.s32.totalorder %s2506_s21, 3 }
   0xb   : > { %p2593_p6 = por %p157_p3, %p43_p0  ;;  %s2508_s27 = smov [#allocation6]  }
   0xc   : > { %s3032_s24 = scalar_select %p2588_p4, 1, 0 }
   0xd   : > { %s3033_s25 = scalar_select %p2593_p6, 1, 0 }
   0xe   : > { %p2598_p8 = pnand %p1863_p5, %p164_p7  ;;  %s176_s28 = sshll.u32 %s2508_s27, 4  ;;  %s2602_s28 = int_to_ptr.vmem [resolvable:$true] %s176_s28 }
   0xf   : > { %s2509_s30 = smov [#allocation8]   ;;  %s2318_s9 = scalar_lea.hbm %s3024_s1, 5120 }
  0x10   : > { %s3034_s26 = scalar_select %p2598_p8, 1, 0 }
  0x11   : > { %p2146_p9 = pneg %p2598_p8  ;;  %s189_s6 = sshll.u32 %s2509_s30, 4  ;;  %s2613_s6 = int_to_ptr.vmem [resolvable:$true] %s189_s6 }
  0x12   : > { %p2319_p12 = scmp.ne.s32.totalorder %s3024_s1, %s2318_s9  ;;  %p2325_p5 = scmp.lt.u32.totalorder %s2318_s9, %s3024_s1 }
  0x13   : > { %p2609_p11 = pnand %p2146_p9, %p3029_p1 }
  0x15   : > { %p2623_p13 = pneg %p2609_p11 }
  0x17   : > { %p2321_p0 = pnand %p2623_p13, %p2319_p12 }
  0x19   : > { %p2322_p3 = pneg %p2321_p0 }
  0x1b   : > { %p2327_p7 = pnand %p2325_p5, %p2322_p3 }
  0x1d   : > { %2330 = shalt.err (!%p2327_p7)
}
  0x1e   : > { %s2331_s15 = scalar_lea.vmem %s2602_s28, 5120  ;;  %p2339_p2 = scmp.lt.s32.totalorder %s2602_s28, %s2602_s28 }
  0x1f   : > { %p2332_p9 = scmp.ne.s32.totalorder %s2602_s28, %s2331_s15  ;;  %p2340_p6 = scmp.lt.s32.totalorder %s2331_s15, %s2331_s15 }
  0x21   : > { %p2334_p10 = pnand %p2332_p9, %p2623_p13  ;;  %p2341_p12 = por %p2340_p6, %p2339_p2 }
  0x23   : > { %p2335_p1 = pneg %p2334_p10 }
  0x25   : > { %p2342_p0 = pnand %p2341_p12, %p2335_p1 }
  0x27   : > { %2345 = shalt.err (!%p2342_p0)
}
  0x28   : > { %s2510_s16 = smov 320   ;;  %s2511_s17 = smov 20  }
  0x29   : > { %2149 = dma.hbm_to_vmem [thread:$0]  (!%p2609_p11), %s3024_s1, 5120, %s2602_s28, [#allocation7], %s2510_s16, %s2510_s16, %s2511_s17  }
  0x2a   : > { %s2346_s8 = scalar_lea.hbm %s3025_s2, 1024 }
  0x2b   : > { %p2347_p2 = scmp.ne.s32.totalorder %s3025_s2, %s2346_s8  ;;  %p2353_p10 = scmp.lt.u32.totalorder %s2346_s8, %s3025_s2 }
  0x2d   : > { %p2349_p1 = pnand %p2347_p2, %p2623_p13 }
  0x2f   : > { %p2350_p6 = pneg %p2349_p1 }
  0x31   : > { %p2355_p3 = pnand %p2353_p10, %p2350_p6 }
  0x33   : > { %2358 = shalt.err (!%p2355_p3)
}
  0x34   : > { %s2359_s28 = scalar_lea.vmem %s2613_s6, 1024  ;;  %p2367_p12 = scmp.lt.s32.totalorder %s2613_s6, %s2613_s6 }
  0x35   : > { %p2360_p5 = scmp.ne.s32.totalorder %s2613_s6, %s2359_s28  ;;  %p2368_p0 = scmp.lt.s32.totalorder %s2359_s28, %s2359_s28 }
  0x37   : > { %p2362_p7 = pnand %p2360_p5, %p2623_p13  ;;  %p2369_p2 = por %p2368_p0, %p2367_p12 }
  0x39   : > { %p2363_p9 = pneg %p2362_p7 }
  0x3b   : > { %p2370_p1 = pnand %p2369_p2, %p2363_p9 }
  0x3d   : > { %2373 = shalt.err (!%p2370_p1)
}
  0x3e   : > { %s2512_s14 = smov 64   ;;  %s2513_s15 = smov 4  }
  0x3f   : > { %2152 = dma.hbm_to_vmem [thread:$0]  (!%p2609_p11), %s3025_s2, 1024, %s2613_s6, [#allocation7], %s2512_s14, %s2512_s14, %s2513_s15  }
  0x40   : > { %s2514_s23 = smov [#allocation9]   ;;  %s2668_s30 = sadd.s32 1, %s2506_s21  }
  0x41   : > { %s206_s27 = sshll.u32 %s2514_s23, 4  ;;  %s2374_s9 = scalar_lea.hbm %s3027_s4, 128  ;;  %s207_s27 = int_to_ptr.vmem [resolvable:$true] %s206_s27 }
  0x42   : > { %p2375_p6 = scmp.ne.s32.totalorder %s3027_s4, %s2374_s9  ;;  %p2381_p5 = scmp.lt.u32.totalorder %s2374_s9, %s3027_s4 }
  0x44   : > { %p2377_p10 = pnand %p2375_p6, %p2623_p13 }
  0x46   : > { %p2378_p3 = pneg %p2377_p10 }
  0x48   : > { %p2383_p7 = pnand %p2381_p5, %p2378_p3 }
  0x4a   : > { %2386 = shalt.err (!%p2383_p7)
}
  0x4b   : > { %s2387_s6 = scalar_lea.vmem %s207_s27, 128  ;;  %p2395_p2 = scmp.lt.s32.totalorder %s207_s27, %s207_s27 }
  0x4c   : > { %p2388_p9 = scmp.ne.s32.totalorder %s207_s27, %s2387_s6  ;;  %p2396_p1 = scmp.lt.s32.totalorder %s2387_s6, %s2387_s6 }
  0x4e   : > { %p2390_p12 = pnand %p2388_p9, %p2623_p13  ;;  %p2397_p4 = por %p2396_p1, %p2395_p2 }
  0x50   : > { %p2391_p0 = pneg %p2390_p12 }
  0x52   : > { %p2398_p8 = pnand %p2397_p4, %p2391_p0 }
  0x54   : > { %2401 = shalt.err (!%p2398_p8)
}
  0x55   : > { %2155 = dma.hbm_to_vmem [thread:$0]  (!%p2609_p11), %s3027_s4, 128, %s207_s27, [#allocation10]  }
  0x56   : > { %s27_s12 = ssub.s32 %s2506_s21, %s2668_s30  ;;  %s30_s16 = sadd.s32 1, %s2502_s20 }
  0x57   : > { %p28_p4 = scmp.eq.s32.totalorder %s27_s12, 0  ;;  %p37_p8 = scmp.ne.s32.totalorder %s2502_s20, %s2498_s19 }
  0x58   : > { %p38_p13 = scmp.eq.s32.totalorder %s2506_s21, 0  ;;  %p2167_p6 = scmp.lt.s32.totalorder %s2506_s21, 2 }
  0x59   : > { %s2696_s29 = scalar_select %p28_p4, %s2502_s20, %s30_s16  }
  0x5a   : > { %p39_p10 = por %p38_p13, %p37_p8  ;;  %p3037_p3 = scmp.eq.s32.totalorder %s2579_s22, 1 }
  0x5b   : > { %s217_s23 = sand.u32 1, %s2502_s20   ;;  %s1869_s7 = sshll.u32 %s2506_s21, 6 }
  0x5c   : > { %p2700_p5 = por %p3037_p3, %p37_p8  ;;  %s1868_s8 = sshll.u32 %s217_s23, 2 }
  0x5d   : > { %s2709_s27 = scalar_lea.hbm %s3023_s0, %s1869_s7  ;;  %s221_s11 = scalar_lea.vmem [#allocation3], %s1868_s8 }
  0x5e   : > { %s228_s13 = sshll.u32 %s221_s11, 4  ;;  %p2711_p11 = pnand %p2167_p6, %p39_p10  ;;  %s2715_s13 = int_to_ptr.vmem [resolvable:$true] %s228_s13 }
  0x5f   : > { %s218_s6 = scalar_lea.sflag [#allocation4], %s217_s23  ;;  %s2402_s14 = scalar_lea.hbm %s2709_s27, 64 }
  0x60   : > { %p2403_p7 = scmp.ne.s32.totalorder %s2709_s27, %s2402_s14  ;;  %p2404_p9 = pneg %p2711_p11 }
  0x61   : > { %s2407_s16 = scalar_lea.hbm %s3023_s0, 128  ;;  %p2408_p2 = scmp.lt.u32.totalorder %s2709_s27, %s3023_s0 }
  0x62   : > { %p2405_p12 = pnand %p2404_p9, %p2403_p7  ;;  %p2409_p1 = scmp.lt.u32.totalorder %s2407_s16, %s2402_s14 }
  0x63   : > { %p2411_p8 = scmp.lt.u32.totalorder %s2402_s14, %s2709_s27 }
  0x64   : > { %p2406_p0 = pneg %p2405_p12  ;;  %p2410_p4 = por %p2409_p1, %p2408_p2 }
  0x66   : > { %p2412_p13 = por %p2411_p8, %p2410_p4 }
  0x68   : > { %p2413_p6 = pnand %p2412_p13, %p2406_p0 }
  0x6a   : > { %2416 = shalt.err (!%p2413_p6)
}
  0x6b   : > { %s2417_s23 = scalar_lea.vmem %s2715_s13, 64  ;;  %s2515_s9 = smov [#allocation3]  }
  0x6c   : > { %p2418_p10 = scmp.ne.s32.totalorder %s2715_s13, %s2417_s23  ;;  %s2422_s10 = sshll.u32 %s2515_s9, 4  ;;  %s2423_s10 = int_to_ptr.vmem [resolvable:$false] %s2422_s10 }
  0x6d   : > { %s2424_s11 = scalar_lea.vmem %s2423_s10, 128  ;;  %p2425_p12 = scmp.lt.s32.totalorder %s2715_s13, %s2423_s10 }
  0x6e   : > { %p2420_p3 = pnand %p2418_p10, %p2404_p9  ;;  %p2426_p2 = scmp.lt.s32.totalorder %s2424_s11, %s2417_s23 }
  0x70   : > { %p2421_p7 = pneg %p2420_p3  ;;  %p2427_p1 = por %p2426_p2, %p2425_p12 }
  0x72   : > { %p2428_p4 = pnand %p2427_p1, %p2421_p7 }
  0x74   : > { %2431 = shalt.err (!%p2428_p4)
}
  0x75   : > { %2159 = dma.hbm_to_vmem [thread:$0]  (!%p2711_p11), %s2709_s27, 64, %s2715_s13, %s218_s6  }
  0x76   : > { %p3040_p0 = scmp.ne.s32.totalorder %s3034_s26, 0 }
  0x77   : > { %s2745_s14 = sand.u32 (!%p3040_p0), 1, %s2498_s19   ;;  %p3041_p9 = scmp.ne.s32.totalorder (!%p3040_p0), %s3032_s24, 0 }
  0x78   : > { %237 = sbr.rel (%p3040_p0) target bundleno = 3200 (0xc80), region = 40  ;;  %s1871_s15 = sshll.u32 (!%p3040_p0), %s2745_s14, 2 }
  0x79   : > { %s240_s12 = scalar_lea.sflag (!%p3040_p0), [#allocation4], %s2745_s14  ;;  %s2749_s16 = scalar_lea.vmem (!%p3040_p0), [#allocation3], %s1871_s15 }
  0x7f   : > { %2477 = dma.done.wait (%p3041_p9), %s240_s12, 64  }
  0x80   : > { %2479 = vsyncadd (%p3041_p9), %s240_s12, 4294967232  ;;  %p3042_p11 = scmp.eq.s32.totalorder %s2579_s22, 0 }
  0x82   : > { %2481 = dma.done.wait (%p3042_p11), [#allocation7], 6144   ;;  %p3043_p8 = pmov %p3042_p11 }
  0x84   : > { %2483 = vsyncadd (%p3043_p8), [#allocation7], 4294961152  ;;  %p3044_p13 = pmov %p3043_p8 }
  0x85   : > { %p3045_p6 = pmov %p3043_p8 }
  0x86   : > { %2485 = dma.done.wait (%p3044_p13), [#allocation10], 128  }
  0x87   : > { %2487 = vsyncadd (%p3045_p6), [#allocation10], 4294967168  ;;  %v2516_v0 = vmov 0   ;;  %v2222_v1 = vld [vmem:[#allocation6 + $0x4] ss:$20 sps:$4 sm:$0xff]   ;;  %v2517_v35 = vmov 0.0  }
  0x88   : > { %572 = vmatprep.mubr.bf16.mxu0 %v2516_v0  ;;  %613 = vmatprep.mubr.bf16.mxu1 %v2516_v0  ;;  %v2224_v2 = vld [vmem:[#allocation6 + $0xc] ss:$20 sps:$4 sm:$0xff]   ;;  %v2227_v4 = vld [vmem:[#allocation6 + $0x8] ss:$20 sps:$4 sm:$0xff]   ;;  %v2233_v8 = vld [vmem:[#allocation6 + $0x30] ss:$20 sps:$4 sm:$0xff]  }
  0x89   : > { %540 = vmatprep.subr.bf16.mxu0 %v2222_v1  ;;  %v2226_v3 = vld [vmem:[#allocation6] ss:$20 sps:$4 sm:$0xff]   ;;  %581 = vmatprep.subr.bf16.mxu1 %v2224_v2  ;;  %v2232_v7 = vld [vmem:[#allocation6 + $0x28] ss:$20 sps:$4 sm:$0xff]   ;;  %v2238_v11 = vld [vmem:[#allocation6 + $0x50] ss:$20 sps:$4 sm:$0xff]  }
  0x8a   : > { %v2228_v5 = vld [vmem:[#allocation6 + $0x2c] ss:$20 sps:$4 sm:$0xff]   ;;  %541 = vmatpush1.bf16.msra.mxu0 %v2226_v3  ;;  %582 = vmatpush1.bf16.msra.mxu1 %v2227_v4  ;;  %v2230_v6 = vld [vmem:[#allocation6 + $0x34] ss:$20 sps:$4 sm:$0xff]   ;;  %v2236_v10 = vld [vmem:[#allocation6 + $0x5c] ss:$20 sps:$4 sm:$0xff]   ;;  %v670_v4 = vlaneseq }
  0x8b   : > { %542 = vmatprep.subr.bf16.mxu0 %v2228_v5  ;;  %583 = vmatprep.subr.bf16.mxu1 %v2230_v6  ;;  %v2234_v9 = vld [vmem:[#allocation6 + $0x54] ss:$20 sps:$4 sm:$0xff]   ;;  %v2239_v12 = vld [vmem:[#allocation6 + $0x58] ss:$20 sps:$4 sm:$0xff]   ;;  %v2240_v13 = vld [vmem:[#allocation6 + $0x7c] ss:$20 sps:$4 sm:$0xff]  }
  0x8c   : > { %v2242_v14 = vld [vmem:[#allocation6 + $0x84] ss:$20 sps:$4 sm:$0xff]   ;;  %v2245_v16 = vld [vmem:[#allocation6 + $0x80] ss:$20 sps:$4 sm:$0xff]   ;;  %v2251_v20 = vld [vmem:[#allocation6 + $0xa8] ss:$20 sps:$4 sm:$0xff]  }
  0x8d   : > { %v2244_v15 = vld [vmem:[#allocation6 + $0x78] ss:$20 sps:$4 sm:$0xff]   ;;  %v2250_v19 = vld [vmem:[#allocation6 + $0xa0] ss:$20 sps:$4 sm:$0xff]   ;;  %v2256_v23 = vld [vmem:[#allocation6 + $0xc8] ss:$20 sps:$4 sm:$0xff]  }
  0x8e   : > { %543 = vmatpush1.bf16.msra.mxu0 %v2232_v7  ;;  %584 = vmatpush1.bf16.msra.mxu1 %v2233_v8  ;;  %v2246_v17 = vld [vmem:[#allocation6 + $0xa4] ss:$20 sps:$4 sm:$0xff]   ;;  %v2248_v18 = vld [vmem:[#allocation6 + $0xac] ss:$20 sps:$4 sm:$0xff]   ;;  %v2254_v22 = vld [vmem:[#allocation6 + $0xd4] ss:$20 sps:$4 sm:$0xff]  }
  0x8f   : > { %544 = vmatprep.subr.bf16.mxu0 %v2234_v9  ;;  %585 = vmatprep.subr.bf16.mxu1 %v2236_v10  ;;  %v2252_v21 = vld [vmem:[#allocation6 + $0xcc] ss:$20 sps:$4 sm:$0xff]   ;;  %v2257_v24 = vld [vmem:[#allocation6 + $0xd0] ss:$20 sps:$4 sm:$0xff]   ;;  %v2258_v25 = vld [vmem:[#allocation6 + $0xf4] ss:$20 sps:$4 sm:$0xff]  }
  0x90   : > { %v2260_v26 = vld [vmem:[#allocation6 + $0xfc] ss:$20 sps:$4 sm:$0xff]   ;;  %v2263_v28 = vld [vmem:[#allocation6 + $0xf8] ss:$20 sps:$4 sm:$0xff]   ;;  %v2269_v32 = vld [vmem:[#allocation6 + $0x120] ss:$20 sps:$4 sm:$0xff]  }
  0x91   : > { %v2262_v27 = vld [vmem:[#allocation6 + $0xf0] ss:$20 sps:$4 sm:$0xff]   ;;  %v2268_v31 = vld [vmem:[#allocation6 + $0x118] ss:$20 sps:$4 sm:$0xff]   ;;  %vm2518_vm0 = vmmov 0   ;;  %vm679_vm1 = vcmask 130048  }
  0x92   : > { %545 = vmatpush1.bf16.msra.mxu0 %v2238_v11  ;;  %586 = vmatpush1.bf16.msra.mxu1 %v2239_v12  ;;  %v2264_v29 = vld [vmem:[#allocation6 + $0x11c] ss:$20 sps:$4 sm:$0xff]   ;;  %v2266_v30 = vld [vmem:[#allocation6 + $0x124] ss:$20 sps:$4 sm:$0xff]   ;;  %v2272_v37 = vld [vmem:[#allocation6 + $0x60] ss:$20 sps:$4 sm:$0xff]  }
  0x93   : > { %546 = vmatprep.subr.bf16.mxu0 %v2240_v13  ;;  %587 = vmatprep.subr.bf16.mxu1 %v2242_v14  ;;  %v283_v33 = vld [vmem:[%s2749_s16] sm:$0xf]  ;;  %v2270_v34 = vld [vmem:[#allocation6 + $0x10] ss:$20 sps:$4 sm:$0xff]   ;;  %v2276_v41 = vld [vmem:[#allocation6 + $0x100] ss:$20 sps:$4 sm:$0xff]  }
  0x94   : > { %v2271_v36 = vld [vmem:[#allocation6 + $0x38] ss:$20 sps:$4 sm:$0xff]   ;;  %v2273_v38 = vld [vmem:[#allocation6 + $0x88] ss:$20 sps:$4 sm:$0xff]   ;;  %v2274_v39 = vld [vmem:[#allocation6 + $0xb0] ss:$20 sps:$4 sm:$0xff]  }
  0x95   : > { %v2275_v40 = vld [vmem:[#allocation6 + $0xd8] ss:$20 sps:$4 sm:$0xff]   ;;  %v2277_v42 = vld [vmem:[#allocation6 + $0x128] ss:$20 sps:$4 sm:$0xff]   ;;  %v662_v43 = vld [vmem:[%s3026_s3] sm:$0xff]  ;;  %s2519_s27 = smov 112  }
  0x96   : > { %547 = vmatpush1.bf16.msra.mxu0 %v2244_v15  ;;  %588 = vmatpush1.bf16.msra.mxu1 %v2245_v16  ;;  %v663_v44 = vld [vmem:[#allocation9] sm:$0xff]  ;;  %vm747_vm2 = vcmask 1043456   ;;  %v671_v5 = vshrl.u32 %v670_v4, 7  ;;  %v673_v6 = vand.u32 127, %v670_v4  ;;  %v2520_v8 = vmov -1e+09  }
  0x97   : > { %548 = vmatprep.subr.bf16.mxu0 %v2246_v17  ;;  %589 = vmatprep.subr.bf16.mxu1 %v2248_v18  ;;  %vm728_vm4 = vcmask 64512   ;;  %s2521_s13 = smov 96   ;;  %s2522_s28 = smov 64   ;;  %vm914_vm5 = vcmask 261248   ;;  %vm1035_vm6 = vcmask 392448   ;;  %vm1156_vm7 = vcmask 523648  }
  0x98   : > { %vm674_vm3 = vcmp.ge.s32.totalorder %v671_v5, %v673_v6  ;;  %s2523_s6 = smov 16   ;;  %s2524_s7 = smov 80   ;;  %vm1277_vm8 = vcmask 654848   ;;  %vm1398_vm9 = vcmask 786048   ;;  %vm1519_vm10 = vcmask 917248  }
  0x99   : > { %v2803_v9 = vsel %vm674_vm3, 0.0, %v2520_v8  ;;  %s2525_s8 = smov 48   ;;  %s2526_s23 = smov 32   ;;  %vm1640_vm11 = vcmask 1048448  }
  0x9a   : > { %549 = vmatpush1.bf16.msra.mxu0 %v2250_v19  ;;  %590 = vmatpush1.bf16.msra.mxu1 %v2251_v20  ;;  %s1875_s9 = sshll.u32 %s2745_s14, 3  ;;  %s1941_s15 = sshll.u32 %s2579_s22, 7 }
  0x9b   : > { %550 = vmatprep.subr.bf16.mxu0 %v2252_v21  ;;  %591 = vmatprep.subr.bf16.mxu1 %v2254_v22  ;;  %s281_s10 = scalar_lea.vmem [#allocation11], %s1875_s9  ;;  %s2981_s24 = scalar_lea.hbm %s3028_s5, %s1941_s15 }
  0x9c   : > { %s1763_s11 = sshll.u32 %s281_s10, 4  ;;  %s1750_s26 = scalar_lea.sflag [#allocation5], %s2745_s14  ;;  %s2976_s11 = int_to_ptr.vmem [resolvable:$true] %s1763_s11 }
  0x9d   : > { %s2527_s22 = smov [#allocation11]  }
  0x9e   : > { %551 = vmatpush1.bf16.msra.mxu0 %v2256_v23  ;;  %592 = vmatpush1.bf16.msra.mxu1 %v2257_v24 }
  0x9f   : > { %552 = vmatprep.subr.bf16.mxu0 %v2258_v25  ;;  %593 = vmatprep.subr.bf16.mxu1 %v2260_v26 }
  0xa2   : > { %553 = vmatpush1.bf16.msra.mxu0 %v2262_v27  ;;  %594 = vmatpush1.bf16.msra.mxu1 %v2263_v28 }
  0xa3   : > { %554 = vmatprep.subr.bf16.mxu0 %v2264_v29  ;;  %595 = vmatprep.subr.bf16.mxu1 %v2266_v30 }
  0xa6   : > { %555 = vmatpush1.bf16.msra.mxu0 %v2268_v31  ;;  %596 = vmatpush1.bf16.msra.mxu1 %v2269_v32 }
  0xa7   : > { %1994 = vmatprep.subr.bf16.mxu0 %v2517_v35  ;;  %2014 = vmatprep.subr.bf16.mxu1 %v2517_v35 }
  0xa9   : > { %573 = vmatmul.mubr.bf16.vlgmr.msra.gmra.mrb[0].mxu0 %v283_v33  ;;  %614 = vmatmul.mubr.bf16.vlgmr.msra.gmra.mrb[0].mxu1 %v283_v33 }
  0xaa   : > { %1995 = vmatpush3.bf16.msra.mxu0 %v2270_v34  ;;  %2010 = vmatprep.mubr.msk.bf16.mxu0 %vm2518_vm0, %v2517_v35 }
  0xab   : > { %1996 = vmatprep.subr.bf16.mxu0 %v2517_v35  ;;  %2016 = vmatprep.mubr.msk.bf16.mxu1 %vm2518_vm0, %v2517_v35 }
  0xae   : > { %1997 = vmatpush3.bf16.msra.mxu0 %v2271_v36 }
  0xaf   : > { %1998 = vmatprep.subr.bf16.mxu0 %v2517_v35 }
  0xb2   : > { %1999 = vmatpush3.bf16.msra.mxu0 %v2272_v37 }
  0xb3   : > { %2000 = vmatprep.subr.bf16.mxu0 %v2517_v35 }
  0xb6   : > { %2001 = vmatpush3.bf16.msra.mxu0 %v2273_v38 }
  0xb7   : > { %2002 = vmatprep.subr.bf16.mxu0 %v2517_v35 }
  0xba   : > { %2003 = vmatpush3.bf16.msra.mxu0 %v2274_v39 }
  0xbb   : > { %2004 = vmatprep.subr.bf16.mxu0 %v2517_v35 }
  0xbe   : > { %2005 = vmatpush3.bf16.msra.mxu0 %v2275_v40 }
  0xbf   : > { %2006 = vmatprep.subr.bf16.mxu0 %v2517_v35 }
  0xc2   : > { %2007 = vmatpush3.bf16.msra.mxu0 %v2276_v41 }
  0xc3   : > { %2008 = vmatprep.subr.bf16.mxu0 %v2517_v35 }
  0xc6   : > { %2009 = vmatpush3.bf16.msra.mxu0 %v2277_v42 }
  0xc7   : > { %2062 = vmatprep.subr.bf16.mxu0 %v2517_v35 }
  0xc9   : > { %2011 = vmatmul.mubr.bf16.vlgmr.msra.gmra.mrb[4].mxu0 %v283_v33 }
  0xca   : > { %2064 = vmatprep.mubr.msk.bf16.mxu0 %vm2518_vm0, %v2517_v35 }
 0x17c   : > { %v574_v45 = vpop.f32.mrb[0].mxu0  ;;  %v615_v46 = vpop.f32.mrb[0].mxu1 }
 0x17d   : > { %v664_v47 = vmul.f32 %v662_v43, %v574_v45  ;;  %v576_v48 = vpop.f32.mrb[1].mxu0  ;;  %v617_v49 = vpop.f32.mrb[1].mxu1  ;;  %v2792_v2 = vpack.c.bf16 %v615_v46, %v615_v46 }
 0x17e   : > { %v665_v50 = vmul.f32 %v663_v44, %v617_v49  ;;  %v578_v51 = vpop.f32.mrb[2].mxu0  ;;  %v619_v52 = vpop.f32.mrb[2].mxu1  ;;  %v667_v57 = vmul.f32 %v662_v43, %v576_v48 }
 0x17f   : > { %v579_v53 = vpop.f32.mrb[3].mxu0  ;;  %v620_v54 = vpop.f32.mrb[3].mxu1  ;;  %v749_v3 = vsel %vm747_vm2, %v2792_v2, 0 }
 0x180   : > { %v666_v55 = vadd.f32 %v665_v50, %v664_v47 }
 0x182   : > { %v2789_v1 = vpack.c.bf16 %v666_v55, %v666_v55 }
 0x19c   : > { %v656_v56 = vpop.f32.mrb[4].mxu0 }
 0x19d   : > { %v668_v58 = vmul.f32 %v663_v44, %v656_v56  ;;  %v2012_v59 = vpop.f32.mrb[5].mxu0 }
 0x19e   : > { %v659_v60 = vpop.f32.mrb[6].mxu0 }
 0x19f   : > { %v669_v61 = vadd.f32 %v668_v58, %v667_v57  ;;  %v2013_v62 = vpop.f32.mrb[7].mxu0 }
 0x1a1   : > { %v2783_v63 = vpack.c.bf16 %v669_v61, %v669_v61 }
 0x1a3   : > { %796 = vrot.lane.b32.xlu1 %v2783_v63, %s2519_s27  ;;  %v684_v0 = vsel %vm679_vm1, %v2783_v63, 0 }
 0x1a4   : > { %2015 = vmatpush3.bf16.xpose.msra.mxu1 %v684_v0 }
 0x1a5   : > { %2020 = vmatprep.subr.bf16.mxu1 %v2517_v35 }
 0x1a7   : > { %793 = vrot.lane.b32.xlu1 %v2789_v1, %s2519_s27 }
 0x1ab   : > { %2017 = vmatmul.mubr.msk.bf16.vlgmr.msra.gmra.mrb[4].mxu1 %vm679_vm1, %v2789_v1 }
 0x1ac   : > { %2021 = vmatpush3.bf16.msra.mxu1 %v749_v3  ;;  %2022 = vmatprep.mubr.msk.bf16.mxu1 %vm2518_vm0, %v2517_v35 }
 0x1ad   : > { %2026 = vmatprep.subr.bf16.mxu1 %v2517_v35 }
 0x215   : > { %v797_v26 = vpop.permute.xlu1 %796 }
 0x216   : > { %v802_v28 = vsel %vm679_vm1, %v797_v26, 0 }
 0x219   : > { %v794_v29 = vpop.permute.xlu1 %793 }
 0x27e   : > { %v720_v7 = vpop.f32.mrb[4].mxu1 }
 0x27f   : > { %v726_v10 = vmul.f32 0.25, %v720_v7  ;;  %v2018_v11 = vpop.f32.mrb[5].mxu1 }
 0x280   : > { %v723_v12 = vpop.f32.mrb[6].mxu1 }
 0x281   : > { %v2019_v13 = vpop.f32.mrb[7].mxu1  ;;  %v727_v14 = vadd.f32 %v726_v10, %v2803_v9 }
 0x283   : > { %v729_v15 = vsel %vm728_vm4, %v727_v14, -inf }
 0x284   : > { %730 = vmax.xlane.f32.xlu0 %v729_v15 }
 0x311   : > { %v731_v16 = vpop.xlane.xlu0 %730 }
 0x312   : > { %v732_v17 = vsub.f32 %v727_v14, %v731_v16 }
 0x314   : > { %v733_v18 = vpack.c.bf16 %v732_v17, %v732_v17 }
 0x316   : > { %v735_v19 = vmul.bf16 1069105081, %v733_v18 }
 0x318   : > { %2286 = vpow.bf16 %v735_v19 }
 0x323   : > { %v2287_v20 = vpop.eup %2286 }
 0x324   : > { %v737_v21 = vunpack.c.l.bf16 %v2287_v20 }
 0x326   : > { %v738_v22 = vsel %vm728_vm4, %v737_v21, 0.0 }
 0x327   : > { %739 = vadd.xlane.f32.xlu0 %v738_v22 }
 0x3b4   : > { %v740_v23 = vpop.xlane.xlu0 %739 }
 0x3b5   : > { %2288 = vrcp.f32 %v740_v23 }
 0x3bf   : > { %v2289_v24 = vpop.eup %2288 }
 0x3c0   : > { %v742_v25 = vpack.c.bf16 %v2289_v24, %v2289_v24 }
 0x3c2   : > { %v743_v27 = vmul.bf16 %v2287_v20, %v742_v25 }
 0x3c4   : > { %2023 = vmatmul.mubr.msk.bf16.vlgmr.msra.gmra.mrb[8].mxu1 %vm728_vm4, %v743_v27 }
 0x3c5   : > { %2027 = vmatpush3.bf16.xpose.msra.mxu1 %v802_v28  ;;  %2028 = vmatprep.mubr.msk.bf16.mxu1 %vm2518_vm0, %v2517_v35 }
 0x3c6   : > { %2032 = vmatprep.subr.bf16.mxu1 %v2517_v35 }
 0x3cc   : > { %2029 = vmatmul.mubr.msk.bf16.vlgmr.msra.gmra.mrb[12].mxu1 %vm679_vm1, %v794_v29 }
 0x3cd   : > { %2034 = vmatprep.mubr.msk.bf16.mxu1 %vm2518_vm0, %v2517_v35 }
 0x497   : > { %v785_v30 = vpop.f32.mrb[8].mxu1 }
 0x498   : > { %791 = vst.msk [vmem:[#allocation2] sm:$0xff] %vm679_vm1, %v785_v30  ;;  %v2024_v31 = vpop.f32.mrb[9].mxu1 }
 0x499   : > { %v788_v32 = vpop.f32.mrb[10].mxu1 }
 0x49a   : > { %v2025_v33 = vpop.f32.mrb[11].mxu1 }
 0x49f   : > { %v838_v34 = vpop.f32.mrb[12].mxu1 }
 0x4a0   : > { %v844_v36 = vmul.f32 0.25, %v838_v34  ;;  %v2030_v37 = vpop.f32.mrb[13].mxu1 }
 0x4a1   : > { %v841_v38 = vpop.f32.mrb[14].mxu1 }
 0x4a2   : > { %v2031_v39 = vpop.f32.mrb[15].mxu1  ;;  %v845_v40 = vadd.f32 %v844_v36, %v2803_v9 }
 0x4a4   : > { %v846_v41 = vsel %vm728_vm4, %v845_v40, -inf }
 0x4a5   : > { %847 = vmax.xlane.f32.xlu0 %v846_v41 }
 0x4bb   : > { %862 = vrot.lane.b32.xlu0 %v2792_v2, %s2519_s27 }
 0x4bf   : > { %918 = vrot.lane.b32.xlu0 %v2783_v63, %s2521_s13 }
 0x4c3   : > { %916 = vrot.lane.b32.xlu0 %v2789_v1, %s2521_s13 }
 0x532   : > { %v848_v42 = vpop.xlane.xlu0 %847 }
 0x533   : > { %v849_v43 = vsub.f32 %v845_v40, %v848_v42 }
 0x535   : > { %v850_v44 = vpack.c.bf16 %v849_v43, %v849_v43 }
 0x536   : > { %v863_v45 = vpop.permute.xlu0 %862 }
 0x537   : > { %v852_v46 = vmul.bf16 1069105081, %v850_v44  ;;  %v868_v47 = vsel %vm747_vm2, %v863_v45, 0 }
 0x538   : > { %2033 = vmatpush3.bf16.msra.mxu1 %v868_v47 }
 0x539   : > { %2290 = vpow.bf16 %v852_v46  ;;  %2038 = vmatprep.subr.bf16.mxu1 %v2517_v35 }
 0x53a   : > { %v919_v54 = vpop.permute.xlu0 %918 }
 0x53b   : > { %v924_v56 = vsel %vm679_vm1, %v919_v54, 0 }
 0x53e   : > { %v917_v58 = vpop.permute.xlu0 %916 }
 0x544   : > { %v2291_v48 = vpop.eup %2290 }
 0x545   : > { %v854_v49 = vunpack.c.l.bf16 %v2291_v48 }
 0x547   : > { %v855_v50 = vsel %vm728_vm4, %v854_v49, 0.0 }
 0x548   : > { %856 = vadd.xlane.f32.xlu1 %v855_v50 }
 0x559   : > { %983 = vrot.lane.b32.xlu1 %v2792_v2, %s2521_s13 }
 0x5d5   : > { %v857_v51 = vpop.xlane.xlu1 %856 }
 0x5d6   : > { %2292 = vrcp.f32 %v857_v51 }
 0x5d9   : > { %v984_v57 = vpop.permute.xlu1 %983 }
 0x5da   : > { %v989_v59 = vsel %vm747_vm2, %v984_v57, 0 }
 0x5e0   : > { %v2293_v52 = vpop.eup %2292 }
 0x5e1   : > { %v859_v53 = vpack.c.bf16 %v2293_v52, %v2293_v52 }
 0x5e3   : > { %v860_v55 = vmul.bf16 %v2291_v48, %v859_v53 }
 0x5e5   : > { %2035 = vmatmul.mubr.msk.bf16.vlgmr.msra.gmra.mrb[16].mxu1 %vm728_vm4, %v860_v55 }
 0x5e6   : > { %2039 = vmatpush3.bf16.xpose.msra.mxu1 %v924_v56  ;;  %2040 = vmatprep.mubr.msk.bf16.mxu1 %vm2518_vm0, %v2517_v35 }
 0x5e7   : > { %2044 = vmatprep.subr.bf16.mxu1 %v2517_v35 }
 0x5ed   : > { %2041 = vmatmul.mubr.msk.bf16.vlgmr.msra.gmra.mrb[20].mxu1 %vm679_vm1, %v917_v58 }
 0x5ee   : > { %2045 = vmatpush3.bf16.msra.mxu1 %v989_v59  ;;  %2046 = vmatprep.mubr.msk.bf16.mxu1 %vm2518_vm0, %v2517_v35 }
 0x5ef   : > { %2050 = vmatprep.subr.bf16.mxu1 %v2517_v35 }
 0x6b8   : > { %v2840_v60 = vpop.f32.mrb[16].mxu1 }
 0x6b9   : > { %v2036_v61 = vpop.f32.mrb[17].mxu1 }
 0x6ba   : > { %v907_v62 = vpop.f32.mrb[18].mxu1 }
 0x6bb   : > { %v2037_v0 = vpop.f32.mrb[19].mxu1 }
 0x6c0   : > { %v960_v3 = vpop.f32.mrb[20].mxu1 }
 0x6c1   : > { %v966_v4 = vmul.f32 0.25, %v960_v3  ;;  %v2042_v5 = vpop.f32.mrb[21].mxu1 }
 0x6c2   : > { %v963_v6 = vpop.f32.mrb[22].mxu1 }
 0x6c3   : > { %v2043_v7 = vpop.f32.mrb[23].mxu1  ;;  %v967_v8 = vadd.f32 %v966_v4, %v2803_v9 }
 0x6c5   : > { %v968_v10 = vsel %vm728_vm4, %v967_v8, -inf }
 0x6c6   : > { %969 = vmax.xlane.f32.xlu0 %v968_v10 }
 0x6dc   : > { %1160 = vrot.lane.b32.xlu0 %v2783_v63, %s2522_s28 }
 0x6e0   : > { %1521 = vrot.lane.b32.xlu0 %v2789_v1, %s2523_s6 }
 0x753   : > { %v970_v11 = vpop.xlane.xlu0 %969 }
 0x754   : > { %v971_v12 = vsub.f32 %v967_v8, %v970_v11 }
 0x756   : > { %v972_v13 = vpack.c.bf16 %v971_v12, %v971_v12 }
 0x757   : > { %v1161_v14 = vpop.permute.xlu0 %1160 }
 0x758   : > { %v974_v15 = vmul.bf16 1069105081, %v972_v13  ;;  %v1166_v16 = vsel %vm679_vm1, %v1161_v14, 0 }
 0x759   : > { %2063 = vmatpush3.bf16.xpose.msra.mxu0 %v1166_v16 }
 0x75a   : > { %2294 = vpow.bf16 %v974_v15  ;;  %2074 = vmatprep.subr.bf16.mxu0 %v2517_v35 }
 0x75b   : > { %v1522_v34 = vpop.permute.xlu0 %1521 }
 0x765   : > { %v2295_v17 = vpop.eup %2294 }
 0x766   : > { %v976_v18 = vunpack.c.l.bf16 %v2295_v17 }
 0x768   : > { %v977_v19 = vsel %vm728_vm4, %v976_v18, 0.0 }
 0x769   : > { %978 = vadd.xlane.f32.xlu1 %v977_v19 }
 0x77a   : > { %1039 = vrot.lane.b32.xlu1 %v2783_v63, %s2524_s7 }
 0x77e   : > { %1037 = vrot.lane.b32.xlu1 %v2789_v1, %s2524_s7 }
 0x782   : > { %1158 = vrot.lane.b32.xlu1 %v2789_v1, %s2522_s28 }
 0x786   : > { %1281 = vrot.lane.b32.xlu1 %v2783_v63, %s2525_s8 }
 0x78a   : > { %1279 = vrot.lane.b32.xlu1 %v2789_v1, %s2525_s8 }
 0x78e   : > { %1402 = vrot.lane.b32.xlu1 %v2783_v63, %s2526_s23 }
 0x792   : > { %1400 = vrot.lane.b32.xlu1 %v2789_v1, %s2526_s23 }
 0x796   : > { %1523 = vrot.lane.b32.xlu1 %v2783_v63, %s2523_s6 }
 0x7f6   : > { %v979_v20 = vpop.xlane.xlu1 %978 }
 0x7f7   : > { %2296 = vrcp.f32 %v979_v20 }
 0x7fa   : > { %v1040_v21 = vpop.permute.xlu1 %1039 }
 0x7fb   : > { %v1045_v27 = vsel %vm679_vm1, %v1040_v21, 0 }
 0x7fe   : > { %v1038_v22 = vpop.permute.xlu1 %1037 }
 0x801   : > { %v2297_v23 = vpop.eup %2296 }
 0x802   : > { %v981_v24 = vpack.c.bf16 %v2297_v23, %v2297_v23  ;;  %v1159_v25 = vpop.permute.xlu1 %1158 }
 0x803   : > { %2065 = vmatmul.mubr.msk.bf16.vlgmr.msra.gmra.mrb[8].mxu0 %vm679_vm1, %v1159_v25 }
 0x804   : > { %v982_v26 = vmul.bf16 %v2295_v17, %v981_v24  ;;  %2076 = vmatprep.mubr.msk.bf16.mxu0 %vm2518_vm0, %v2517_v35 }
 0x806   : > { %2047 = vmatmul.mubr.msk.bf16.vlgmr.msra.gmra.mrb[24].mxu1 %vm728_vm4, %v982_v26  ;;  %v1282_v1 = vpop.permute.xlu1 %1281 }
 0x807   : > { %2051 = vmatpush3.bf16.xpose.msra.mxu1 %v1045_v27  ;;  %v1287_v63 = vsel %vm679_vm1, %v1282_v1, 0  ;;  %2052 = vmatprep.mubr.msk.bf16.mxu1 %vm2518_vm0, %v2517_v35 }
 0x808   : > { %2075 = vmatpush3.bf16.xpose.msra.mxu0 %v1287_v63  ;;  %2056 = vmatprep.subr.bf16.mxu1 %v2517_v35 }
 0x809   : > { %2086 = vmatprep.subr.bf16.mxu0 %v2517_v35 }
 0x80a   : > { %v1280_v28 = vpop.permute.xlu1 %1279 }
 0x80e   : > { %2053 = vmatmul.mubr.msk.bf16.vlgmr.msra.gmra.mrb[28].mxu1 %vm679_vm1, %v1038_v22  ;;  %v1403_v29 = vpop.permute.xlu1 %1402 }
 0x80f   : > { %v1408_v30 = vsel %vm679_vm1, %v1403_v29, 0  ;;  %2077 = vmatmul.mubr.msk.bf16.vlgmr.msra.gmra.mrb[12].mxu0 %vm679_vm1, %v1280_v28  ;;  %2058 = vmatprep.mubr.msk.bf16.mxu1 %vm2518_vm0, %v2517_v35 }
 0x810   : > { %2087 = vmatpush3.bf16.xpose.msra.mxu0 %v1408_v30  ;;  %2088 = vmatprep.mubr.msk.bf16.mxu0 %vm2518_vm0, %v2517_v35 }
 0x811   : > { %2098 = vmatprep.subr.bf16.mxu0 %v2517_v35 }
 0x812   : > { %v1401_v31 = vpop.permute.xlu1 %1400 }
 0x816   : > { %v1524_v32 = vpop.permute.xlu1 %1523 }
 0x817   : > { %v1529_v33 = vsel %vm679_vm1, %v1524_v32, 0  ;;  %2089 = vmatmul.mubr.msk.bf16.vlgmr.msra.gmra.mrb[16].mxu0 %vm679_vm1, %v1401_v31 }
 0x818   : > { %2099 = vmatpush3.bf16.xpose.msra.mxu0 %v1529_v33  ;;  %2100 = vmatprep.mubr.msk.bf16.mxu0 %vm2518_vm0, %v2517_v35 }
 0x819   : > { %2110 = vmatprep.subr.bf16.mxu0 %v2517_v35 }
 0x81f   : > { %2101 = vmatmul.mubr.msk.bf16.vlgmr.msra.gmra.mrb[20].mxu0 %vm679_vm1, %v1522_v34 }
 0x820   : > { %2126 = vmatprep.mubr.msk.bf16.mxu0 %vm2518_vm0, %v2517_v35 }
 0x8d6   : > { %v1202_v36 = vpop.f32.mrb[8].mxu0 }
 0x8d7   : > { %v1208_v37 = vmul.f32 0.25, %v1202_v36  ;;  %v2066_v38 = vpop.f32.mrb[9].mxu0 }
 0x8d8   : > { %v1205_v39 = vpop.f32.mrb[10].mxu0 }
 0x8d9   : > { %v2893_v40 = vpop.f32.mrb[24].mxu1  ;;  %v2067_v41 = vpop.f32.mrb[11].mxu0  ;;  %v1209_v42 = vadd.f32 %v1208_v37, %v2803_v9 }
 0x8da   : > { %v2048_v43 = vpop.f32.mrb[25].mxu1 }
 0x8db   : > { %v1028_v44 = vpop.f32.mrb[26].mxu1  ;;  %v1210_v45 = vsel %vm728_vm4, %v1209_v42, -inf }
 0x8dc   : > { %v2049_v46 = vpop.f32.mrb[27].mxu1  ;;  %1211 = vmax.xlane.f32.xlu0 %v1210_v45 }
 0x8e1   : > { %v1081_v47 = vpop.f32.mrb[28].mxu1 }
 0x8e2   : > { %v1087_v48 = vmul.f32 0.25, %v1081_v47  ;;  %v2054_v49 = vpop.f32.mrb[29].mxu1  ;;  %v1323_v50 = vpop.f32.mrb[12].mxu0 }
 0x8e3   : > { %v1329_v51 = vmul.f32 0.25, %v1323_v50  ;;  %v1084_v52 = vpop.f32.mrb[30].mxu1  ;;  %v2078_v53 = vpop.f32.mrb[13].mxu0 }
 0x8e4   : > { %v2055_v54 = vpop.f32.mrb[31].mxu1  ;;  %v1326_v55 = vpop.f32.mrb[14].mxu0  ;;  %v1088_v56 = vadd.f32 %v1087_v48, %v2803_v9 }
 0x8e5   : > { %v2079_v57 = vpop.f32.mrb[15].mxu0  ;;  %v1330_v58 = vadd.f32 %v1329_v51, %v2803_v9 }
 0x8e6   : > { %v1089_v59 = vsel %vm728_vm4, %v1088_v56, -inf }
 0x8e7   : > { %1090 = vmax.xlane.f32.xlu1 %v1089_v59  ;;  %v1331_v61 = vsel %vm728_vm4, %v1330_v58, -inf }
 0x8e8   : > { %1332 = vmax.xlane.f32.xlu0 %v1331_v61 }
 0x8ea   : > { %v1444_v62 = vpop.f32.mrb[16].mxu0 }
 0x8eb   : > { %v1450_v0 = vmul.f32 0.25, %v1444_v62  ;;  %v2090_v3 = vpop.f32.mrb[17].mxu0 }
 0x8ec   : > { %v1447_v4 = vpop.f32.mrb[18].mxu0 }
 0x8ed   : > { %v2091_v5 = vpop.f32.mrb[19].mxu0  ;;  %v1451_v6 = vadd.f32 %v1450_v0, %v2803_v9 }
 0x8ef   : > { %v1452_v7 = vsel %vm728_vm4, %v1451_v6, -inf }
 0x8f0   : > { %1453 = vmax.xlane.f32.xlu1 %v1452_v7 }
 0x8f2   : > { %v1565_v8 = vpop.f32.mrb[20].mxu0 }
 0x8f3   : > { %v1571_v10 = vmul.f32 0.25, %v1565_v8  ;;  %v2102_v11 = vpop.f32.mrb[21].mxu0 }
 0x8f4   : > { %v1568_v12 = vpop.f32.mrb[22].mxu0 }
 0x8f5   : > { %v2103_v13 = vpop.f32.mrb[23].mxu0  ;;  %v1572_v14 = vadd.f32 %v1571_v10, %v2803_v9 }
 0x8f7   : > { %v1573_v15 = vsel %vm728_vm4, %v1572_v14, -inf }
 0x8f8   : > { %1574 = vmax.xlane.f32.xlu0 %v1573_v15 }
 0x969   : > { %v1212_v16 = vpop.xlane.xlu0 %1211 }
 0x96a   : > { %v1213_v17 = vsub.f32 %v1209_v42, %v1212_v16 }
 0x96c   : > { %v1214_v18 = vpack.c.bf16 %v1213_v17, %v1213_v17 }
 0x96e   : > { %v1216_v19 = vmul.bf16 1069105081, %v1214_v18 }
 0x970   : > { %2298 = vpow.bf16 %v1216_v19 }
 0x974   : > { %v1091_v20 = vpop.xlane.xlu1 %1090 }
 0x975   : > { %v1092_v21 = vsub.f32 %v1088_v56, %v1091_v20  ;;  %v1333_v22 = vpop.xlane.xlu0 %1332  ;;  %v2278_v20 = vld [vmem:[#allocation8] sm:$0xff]  }
 0x976   : > { %v1334_v23 = vsub.f32 %v1330_v58, %v1333_v22  ;;  %2111 = vmatpush3.bf16.msra.mxu0 %v2278_v20 }
 0x977   : > { %v1093_v24 = vpack.c.bf16 %v1092_v21, %v1092_v21  ;;  %v2279_v21 = vld [vmem:[#allocation8 + $0x8] sm:$0xff]   ;;  %2112 = vmatprep.subr.bf16.mxu0 %v2517_v35 }
 0x978   : > { %v1335_v25 = vpack.c.bf16 %v1334_v23, %v1334_v23 }
 0x979   : > { %v1095_v26 = vmul.bf16 1069105081, %v1093_v24 }
 0x97a   : > { %v1337_v27 = vmul.bf16 1069105081, %v1335_v25  ;;  %2113 = vmatpush3.bf16.msra.mxu0 %v2279_v21 }
 0x97b   : > { %v2905_v1 = vpop.eup %2298  ;;  %2300 = vpow.bf16 %v1095_v26  ;;  %2114 = vmatprep.subr.bf16.mxu0 %v2517_v35  ;;  %v2280_v26 = vld [vmem:[#allocation8 + $0x10] sm:$0xff]  }
 0x97c   : > { %2302 = vpow.bf16 %v1337_v27  ;;  %v1218_v9 = vunpack.c.l.bf16 %v2905_v1  ;;  %v2281_v27 = vld [vmem:[#allocation8 + $0x18] sm:$0xff]  }
 0x97d   : > { %v1454_v63 = vpop.xlane.xlu1 %1453 }
 0x97e   : > { %v1455_v28 = vsub.f32 %v1451_v6, %v1454_v63  ;;  %v1219_v29 = vsel %vm728_vm4, %v1218_v9, 0.0  ;;  %2115 = vmatpush3.bf16.msra.mxu0 %v2280_v26 }
 0x97f   : > { %1220 = vadd.xlane.f32.xlu0 %v1219_v29  ;;  %2116 = vmatprep.subr.bf16.mxu0 %v2517_v35  ;;  %v2282_v29 = vld [vmem:[#allocation8 + $0x20] sm:$0xff]  }
 0x980   : > { %v1456_v30 = vpack.c.bf16 %v1455_v28, %v1455_v28 }
 0x982   : > { %v1458_v31 = vmul.bf16 1069105081, %v1456_v30  ;;  %2117 = vmatpush3.bf16.msra.mxu0 %v2281_v27  ;;  %v2283_v30 = vld [vmem:[#allocation8 + $0x28] sm:$0xff]  }
 0x983   : > { %2118 = vmatprep.subr.bf16.mxu0 %v2517_v35 }
 0x984   : > { %2304 = vpow.bf16 %v1458_v31 }
 0x985   : > { %v1575_v32 = vpop.xlane.xlu0 %1574 }
 0x986   : > { %v2301_v33 = vpop.eup %2300  ;;  %v1576_v34 = vsub.f32 %v1572_v14, %v1575_v32  ;;  %2119 = vmatpush3.bf16.msra.mxu0 %v2282_v29 }
 0x987   : > { %v2909_v36 = vpop.eup %2302  ;;  %v1097_v42 = vunpack.c.l.bf16 %v2301_v33  ;;  %2120 = vmatprep.subr.bf16.mxu0 %v2517_v35 }
 0x988   : > { %v1577_v37 = vpack.c.bf16 %v1576_v34, %v1576_v34  ;;  %v1339_v38 = vunpack.c.l.bf16 %v2909_v36 }
 0x989   : > { %v1098_v43 = vsel %vm728_vm4, %v1097_v42, 0.0 }
 0x98a   : > { %v1579_v39 = vmul.bf16 1069105081, %v1577_v37  ;;  %v1340_v41 = vsel %vm728_vm4, %v1339_v38, 0.0  ;;  %2121 = vmatpush3.bf16.msra.mxu0 %v2283_v30  ;;  %v2285_v37 = vld [vmem:[#allocation8 + $0x38] sm:$0xff]  }
 0x98b   : > { %1341 = vadd.xlane.f32.xlu1 %v1340_v41  ;;  %2122 = vmatprep.subr.bf16.mxu0 %v2517_v35 }
 0x98c   : > { %2306 = vpow.bf16 %v1579_v39 }
 0x98f   : > { %v2914_v44 = vpop.eup %2304  ;;  %1099 = vadd.xlane.f32.xlu1 %v1098_v43 }
 0x990   : > { %v1460_v45 = vunpack.c.l.bf16 %v2914_v44 }
 0x992   : > { %v1461_v46 = vsel %vm728_vm4, %v1460_v45, 0.0 }
 0x993   : > { %1462 = vadd.xlane.f32.xlu0 %v1461_v46 }
 0x997   : > { %v2918_v47 = vpop.eup %2306 }
 0x998   : > { %v1581_v48 = vunpack.c.l.bf16 %v2918_v47 }
 0x99a   : > { %v1582_v49 = vsel %vm728_vm4, %v1581_v48, 0.0 }
 0x99b   : > { %1583 = vadd.xlane.f32.xlu0 %v1582_v49 }
 0x9a0   : > { %1104 = vrot.lane.b32.xlu1 %v2792_v2, %s2524_s7 }
 0x9a4   : > { %1346 = vrot.lane.b32.xlu1 %v2792_v2, %s2525_s8 }
 0x9a8   : > { %1467 = vrot.lane.b32.xlu1 %v2792_v2, %s2526_s23 }
 0x9ac   : > { %1588 = vrot.lane.b32.xlu1 %v2792_v2, %s2523_s6 }
 0x9b0   : > { %1032 = vrot.lane.b32.xlu1 %v2893_v40, %s2526_s23 }
 0x9b1   : > { %1225 = vrot.lane.b32.xlu0 %v2792_v2, %s2522_s28 }
 0x9b5   : > { %911 = vrot.lane.b32.xlu0 %v2840_v60, %s2523_s6 }
 0xa0c   : > { %v1221_v52 = vpop.xlane.xlu0 %1220 }
 0xa18   : > { %v1342_v50 = vpop.xlane.xlu1 %1341 }
 0xa1c   : > { %v1100_v51 = vpop.xlane.xlu1 %1099 }
 0xa1d   : > { %2308 = vrcp.f32 %v1100_v51 }
 0xa1e   : > { %2310 = vrcp.f32 %v1221_v52 }
 0xa1f   : > { %2312 = vrcp.f32 %v1342_v50 }
 0xa20   : > { %v1105_v53 = vpop.permute.xlu1 %1104  ;;  %v1463_v55 = vpop.xlane.xlu0 %1462 }
 0xa21   : > { %v1110_v54 = vsel %vm747_vm2, %v1105_v53, 0  ;;  %2314 = vrcp.f32 %v1463_v55 }
 0xa22   : > { %2057 = vmatpush3.bf16.msra.mxu1 %v1110_v54 }
 0xa23   : > { %2068 = vmatprep.subr.bf16.mxu1 %v2517_v35 }
 0xa24   : > { %v1347_v56 = vpop.permute.xlu1 %1346 }
 0xa25   : > { %v1352_v8 = vsel %vm747_vm2, %v1347_v56, 0 }
 0xa27   : > { %v2309_v40 = vpop.eup %2308 }
 0xa28   : > { %v1102_v57 = vpack.c.bf16 %v2309_v40, %v2309_v40  ;;  %v1468_v58 = vpop.permute.xlu1 %1467  ;;  %v1584_v2 = vpop.xlane.xlu0 %1583 }
 0xa29   : > { %v2311_v60 = vpop.eup %2310  ;;  %2316 = vrcp.f32 %v1584_v2  ;;  %v1473_v13 = vsel %vm747_vm2, %v1468_v58, 0 }
 0xa2a   : > { %v1103_v59 = vmul.bf16 %v2301_v33, %v1102_v57  ;;  %v1223_v3 = vpack.c.bf16 %v2311_v60, %v2311_v60  ;;  %v2313_v7 = vpop.eup %2312 }
 0xa2b   : > { %v1344_v10 = vpack.c.bf16 %v2313_v7, %v2313_v7  ;;  %v2315_v12 = vpop.eup %2314 }
 0xa2c   : > { %2059 = vmatmul.mubr.msk.bf16.vlgmr.msra.gmra.mrb[32].mxu1 %vm728_vm4, %v1103_v59  ;;  %v1589_v61 = vpop.permute.xlu1 %1588  ;;  %v1226_v62 = vpop.permute.xlu0 %1225  ;;  %v1224_v6 = vmul.bf16 %v2905_v1, %v1223_v3  ;;  %v1465_v14 = vpack.c.bf16 %v2315_v12, %v2315_v12 }
 0xa2d   : > { %v1231_v0 = vsel %vm747_vm2, %v1226_v62, 0  ;;  %2070 = vmatprep.mubr.msk.bf16.mxu1 %vm2518_vm0, %v2517_v35  ;;  %v1345_v11 = vmul.bf16 %v2909_v36, %v1344_v10  ;;  %v1594_v17 = vsel %vm747_vm2, %v1589_v61, 0  ;;  %v2284_v36 = vld [vmem:[#allocation8 + $0x30] sm:$0xff]  }
 0xa2e   : > { %2069 = vmatpush3.bf16.msra.mxu1 %v1231_v0  ;;  %v1466_v15 = vmul.bf16 %v2914_v44, %v1465_v14  ;;  %2123 = vmatpush3.bf16.msra.mxu0 %v2284_v36 }
 0xa2f   : > { %2080 = vmatprep.subr.bf16.mxu1 %v2517_v35  ;;  %2124 = vmatprep.subr.bf16.mxu0 %v2517_v35 }
 0xa30   : > { %v1033_v4 = vpop.permute.xlu1 %1032  ;;  %v912_v5 = vpop.permute.xlu0 %911 }
 0xa31   : > { %915 = vst.msk [vmem:[#allocation2] sm:$0xff] %vm914_vm5, %v912_v5 }
 0xa32   : > { %1036 = vst.msk [vmem:[#allocation2] sm:$0xff] %vm1035_vm6, %v1033_v4  ;;  %2125 = vmatpush3.bf16.msra.mxu0 %v2285_v37 }
 0xa33   : > { %v2317_v16 = vpop.eup %2316 }
 0xa34   : > { %2071 = vmatmul.mubr.msk.bf16.vlgmr.msra.gmra.mrb[36].mxu1 %vm728_vm4, %v1224_v6  ;;  %v1586_v18 = vpack.c.bf16 %v2317_v16, %v2317_v16 }
 0xa35   : > { %2081 = vmatpush3.bf16.msra.mxu1 %v1352_v8  ;;  %2082 = vmatprep.mubr.msk.bf16.mxu1 %vm2518_vm0, %v2517_v35 }
 0xa36   : > { %2092 = vmatprep.subr.bf16.mxu1 %v2517_v35  ;;  %v1587_v19 = vmul.bf16 %v2918_v47, %v1586_v18 }
 0xa3c   : > { %2083 = vmatmul.mubr.msk.bf16.vlgmr.msra.gmra.mrb[40].mxu1 %vm728_vm4, %v1345_v11 }
 0xa3d   : > { %2093 = vmatpush3.bf16.msra.mxu1 %v1473_v13  ;;  %2094 = vmatprep.mubr.msk.bf16.mxu1 %vm2518_vm0, %v2517_v35 }
 0xa3e   : > { %2104 = vmatprep.subr.bf16.mxu1 %v2517_v35 }
 0xa44   : > { %2095 = vmatmul.mubr.msk.bf16.vlgmr.msra.gmra.mrb[44].mxu1 %vm728_vm4, %v1466_v15 }
 0xa45   : > { %2105 = vmatpush3.bf16.msra.mxu1 %v1594_v17  ;;  %2106 = vmatprep.mubr.msk.bf16.mxu1 %vm2518_vm0, %v2517_v35 }
 0xa4c   : > { %2107 = vmatmul.mubr.msk.bf16.vlgmr.msra.gmra.mrb[48].mxu1 %vm728_vm4, %v1587_v19 }
 0xaff   : > { %v1146_v22 = vpop.f32.mrb[32].mxu1 }
 0xb00   : > { %v2060_v23 = vpop.f32.mrb[33].mxu1  ;;  %1153 = vrot.lane.b32.xlu0 %v1146_v22, %s2525_s8 }
 0xb01   : > { %v1149_v24 = vpop.f32.mrb[34].mxu1 }
 0xb02   : > { %v2061_v25 = vpop.f32.mrb[35].mxu1 }
 0xb07   : > { %v1267_v1 = vpop.f32.mrb[36].mxu1 }
 0xb08   : > { %1274 = vrot.lane.b32.xlu1 %v1267_v1, %s2522_s28  ;;  %v2072_v9 = vpop.f32.mrb[37].mxu1 }
 0xb09   : > { %v1270_v63 = vpop.f32.mrb[38].mxu1 }
 0xb0a   : > { %v2073_v28 = vpop.f32.mrb[39].mxu1 }
 0xb0f   : > { %v1388_v31 = vpop.f32.mrb[40].mxu1 }
 0xb10   : > { %1395 = vrot.lane.b32.xlu0 %v1388_v31, %s2524_s7  ;;  %v2084_v32 = vpop.f32.mrb[41].mxu1 }
 0xb11   : > { %v1391_v33 = vpop.f32.mrb[42].mxu1 }
 0xb12   : > { %v2085_v34 = vpop.f32.mrb[43].mxu1 }
 0xb17   : > { %v1509_v38 = vpop.f32.mrb[44].mxu1 }
 0xb18   : > { %1516 = vrot.lane.b32.xlu1 %v1509_v38, %s2521_s13  ;;  %v2096_v39 = vpop.f32.mrb[45].mxu1  ;;  %s2436_s13 = sshll.u32 %s2527_s22, 4  ;;  %s2437_s13 = int_to_ptr.vmem [resolvable:$false] %s2436_s13 }
 0xb19   : > { %v1512_v41 = vpop.f32.mrb[46].mxu1  ;;  %s2438_s28 = scalar_lea.vmem %s2437_s13, 256  ;;  %p2439_p12 = scmp.lt.s32.totalorder %s2976_s11, %s2437_s13 }
 0xb1a   : > { %v2097_v42 = vpop.f32.mrb[47].mxu1 }
 0xb1f   : > { %v1630_v43 = vpop.f32.mrb[48].mxu1 }
 0xb20   : > { %1637 = vrot.lane.b32.xlu0 %v1630_v43, %s2519_s27  ;;  %v2108_v44 = vpop.f32.mrb[49].mxu1  ;;  %s2432_s27 = scalar_lea.vmem %s2976_s11, 128 }
 0xb21   : > { %v1633_v45 = vpop.f32.mrb[50].mxu1  ;;  %p2433_p10 = scmp.ne.s32.totalorder %s2976_s11, %s2432_s27  ;;  %p2440_p2 = scmp.lt.s32.totalorder %s2438_s28, %s2432_s27 }
 0xb22   : > { %v2109_v46 = vpop.f32.mrb[51].mxu1 }
 0xb23   : > { %p2434_p3 = pnand %p2433_p10, %p2700_p5  ;;  %p2441_p1 = por %p2440_p2, %p2439_p12 }
 0xb25   : > { %p2435_p7 = pneg %p2434_p3 }
 0xb27   : > { %p2442_p4 = pnand %p2441_p1, %p2435_p7 }
 0xb72   : > { %v1154_v47 = vpop.permute.xlu0 %1153 }
 0xb73   : > { %1157 = vst.msk [vmem:[#allocation2] sm:$0xff] %vm1156_vm7, %v1154_v47 }
 0xb7a   : > { %v1275_v48 = vpop.permute.xlu1 %1274 }
 0xb7b   : > { %1278 = vst.msk [vmem:[#allocation2] sm:$0xff] %vm1277_vm8, %v1275_v48 }
 0xb82   : > { %v1396_v35 = vpop.permute.xlu0 %1395 }
 0xb83   : > { %1399 = vst.msk [vmem:[#allocation2] sm:$0xff] %vm1398_vm9, %v1396_v35 }
 0xb8a   : > { %v1517_v49 = vpop.permute.xlu1 %1516 }
 0xb8b   : > { %1520 = vst.msk [vmem:[#allocation2] sm:$0xff] %vm1519_vm10, %v1517_v49 }
 0xb92   : > { %v1638_v50 = vpop.permute.xlu0 %1637 }
 0xb93   : > { %1641 = vst.msk [vmem:[#allocation2] sm:$0xff] %vm1640_vm11, %v1638_v50 }
 0xb9a   : > { %v1642_v51 = vld [vmem:[#allocation2] sm:$0xff] }
 0xb9b   : > { %v1643_v52 = vpack.c.bf16 %v1642_v51, %v1642_v51 }
 0xb9d   : > { %2127 = vmatmul.mubr.bf16.vlgmr.msra.gmra.mrb[24].mxu0 %v1643_v52 }
 0xc70   : > { %v1742_v53 = vpop.f32.mrb[24].mxu0 }
 0xc71   : > { %1748 = vst [vmem:[%s281_s10] sm:$0xff] %v1742_v53  ;;  %v2128_v54 = vpop.f32.mrb[25].mxu0 }
 0xc72   : > { %v1745_v55 = vpop.f32.mrb[26].mxu0 }
 0xc73   : > { %2445 = shalt.err (!%p2442_p4)
}
 0xc74   : > { %s2446_s14 = scalar_lea.hbm %s2981_s24, 128  ;;  %s2450_s8 = scalar_lea.hbm %s3028_s5, 256 }
 0xc75   : > { %p2447_p0 = scmp.ne.s32.totalorder %s2981_s24, %s2446_s14  ;;  %p2451_p8 = scmp.lt.u32.totalorder %s2981_s24, %s3028_s5 }
 0xc76   : > { %p2452_p13 = scmp.lt.u32.totalorder %s2450_s8, %s2446_s14  ;;  %p2454_p10 = scmp.lt.u32.totalorder %s2446_s14, %s2981_s24 }
 0xc77   : > { %p2448_p9 = pnand %p2447_p0, %p2700_p5 }
 0xc78   : > { %p2453_p6 = por %p2452_p13, %p2451_p8 }
 0xc79   : > { %p2449_p11 = pneg %p2448_p9 }
 0xc7a   : > { %p2455_p3 = por %p2454_p10, %p2453_p6 }
 0xc7c   : > { %p2456_p7 = pnand %p2455_p3, %p2449_p11 }
 0xc7e   : > { %2459 = shalt.err (!%p2456_p7)
}
 0xc7f   : > { %2144 = dma.vmem_to_hbm [thread:$0]  (%p2700_p5), %s2976_s11, 128, %s2981_s24, %s1750_s26   ;;  %v2129_v56 = vpop.f32.mrb[27].mxu0 }
 0xc80 PF: > { %s1775_s10 = sand.u32 1, %s2494_s18   ;;  %p3046_p12 = scmp.ne.s32.totalorder %s3033_s25, 0 }
 0xc81   : > { %p3047_p2 = scmp.ge.s32.totalorder %s2506_s21, 2  ;;  %s1776_s15 = scalar_lea.sflag [#allocation5], %s1775_s10 }
 0xc83   : > { %p2161_p1 = pnand %p3047_p2, %p3046_p12 }
 0xc85   : > { %2489 = dma.done.wait (!%p2161_p1), %s1776_s15, 128  }
 0xc86   : > { %2491 = vsyncadd (!%p2161_p1), %s1776_s15, 4294967168  ;;  %p20_p4 = scmp.ge.s32.totalorder %s2668_s30, 4   ;;  %s3048_s18 = smov %s2498_s19 }
 0xc87   : > { %s3049_s19 = smov %s2502_s20  ;;  %s3050_s20 = smov %s2696_s29 }
 0xc88   : > { %s3051_s21 = smov %s2668_s30  ;;  %22 = sbr.rel (!%p20_p4) target bundleno = 7 (0x7), region = 97 }
 0xc8f   :  { %1781 = vsyncpa [#allocation4], 1 }
 0xc90   :  { %1783 = vsyncpa [#allocation4 + $0x1], 1 }
 0xc91   :  { %1784 = vsyncpa [#allocation7], 1 }
 0xc92   :  { %1785 = vsyncpa [#allocation10], 1 }
 0xc93   :  { %1786 = vsyncpa [#allocation5], 1 }
 0xc94   :  { %1788 = vsyncpa [#allocation5 + $0x1], 1 }

</bundles_post_ra>
